<compile_context>
chip_gen: v5e
topology: v5e:2x2
jax: 0.10.0
libtpu: 0.0.40
codegen_flags: <defaults>
</compile_context>

<pallas_src>
import functools
import math

import jax
import jax.numpy as jnp
import numpy as np
from jax import lax
from jax.experimental import pallas as pl
from jax.experimental.pallas import tpu as pltpu

_SQRT_HALF = 1.0 / math.sqrt(2.0)


def _device_defaults():
    """Per-TPU-generation scoped VMEM limit and tile preferences."""
    kind = ""
    try:
        kind = jax.devices()[0].device_kind.lower()
    except Exception:
        pass
    if "v7" in kind:
        # 64 MiB VMEM per TensorCore -> conservative scoped limit & tiles.
        return {"vmem": 32 * 1024 * 1024, "tm": 256, "tn": 256, "tk": 512, "ts": 256}
    # v5e / v6e: 128 MiB physical VMEM -> larger scoped limit & tiles.
    return {"vmem": 64 * 1024 * 1024, "tm": 512, "tn": 512, "tk": 1024, "ts": 512}


_DEV = _device_defaults()
_VMEM_LIMIT = _DEV["vmem"]


def _pick_tile(dim, pref, step):
    """Largest tile <= pref that is a multiple of `step` and divides `dim`;
    falls back to the full dim (a full-extent block is always legal)."""
    if dim <= pref:
        return dim
    t = (pref // step) * step
    while t >= step:
        if dim % t == 0:
            return t
        t -= step
    return dim


def _gelu(y):
    # exact erf-based GELU, matching torch.nn.GELU() default
    return 0.5 * y * (1.0 + lax.erf(y * _SQRT_HALF))


# --------------------- general tiled linear (proj_in/out, cond) ---------------------

def _matmul_kernel(x_ref, w_ref, b_ref, o_ref, acc_ref):
    @pl.when(pl.program_id(2) == 0)
    def _():
        acc_ref[...] = jnp.zeros_like(acc_ref)

    acc_ref[...] += lax.dot_general(
        x_ref[...].astype(jnp.bfloat16), w_ref[...].astype(jnp.bfloat16),
        dimension_numbers=(((1,), (0,)), ((), ())),
        preferred_element_type=jnp.float32)

    @pl.when(pl.program_id(2) == pl.num_programs(2) - 1)
    def _():
        o_ref[...] = (acc_ref[...] + b_ref[...].astype(jnp.float32)).astype(o_ref.dtype)


def linear(x, w_t, b):
    """y = x @ w_t + b  for x: (..., K), w_t: (K, N) pre-transposed, b: (N,)."""
    *lead, K = x.shape
    M = int(np.prod(lead)) if lead else 1
    N = w_t.shape[1]
    x2 = x.reshape(M, K)
    b2 = b.reshape(1, N)
    tm = _pick_tile(M, _DEV["tm"], 8)
    tn = _pick_tile(N, _DEV["tn"], 128)
    tk = _pick_tile(K, _DEV["tk"], 128)
    out = pl.pallas_call(
        _matmul_kernel,
        out_shape=jax.ShapeDtypeStruct((M, N), x.dtype),
        grid=(M // tm, N // tn, K // tk),
        in_specs=[pl.BlockSpec((tm, tk), lambda i, j, k: (i, k)),
                  pl.BlockSpec((tk, tn), lambda i, j, k: (k, j)),
                  pl.BlockSpec((1, tn), lambda i, j, k: (0, j))],
        out_specs=pl.BlockSpec((tm, tn), lambda i, j, k: (i, j)),
        scratch_shapes=[pltpu.VMEM((tm, tn), jnp.float32)],
        compiler_params=pltpu.CompilerParams(
            dimension_semantics=("parallel", "parallel", "arbitrary"),
            vmem_limit_bytes=_VMEM_LIMIT),
    )(x2, w_t, b2)
    return out.reshape(*lead, N)


# ------------------ fused LayerNorm + adaLN modulation + linear (+GELU) -------------

def _lnmod_linear_kernel(x_ref, g_ref, bt_ref, w_ref, b_ref, o_ref, xm_ref,
                         *, eps, gelu):
    # x: (ts, K), g/bt: (1, K), w: (K, tn), b: (1, tn), o: (ts, tn)
    # LayerNorm + modulation is computed ONCE per (bi, si) at ni == 0 and cached
    # in a bf16 VMEM scratch; the x block index is constant across ni so Pallas
    # also skips re-fetching x.  (Weight is streamed per (bi, si); for
    # weight-dominant shapes flip the grid order or enlarge ts.)
    @pl.when(pl.program_id(2) == 0)
    def _():
        x = x_ref[...].astype(jnp.float32)
        mu = jnp.mean(x, axis=-1, keepdims=True)
        var = jnp.mean(jnp.square(x - mu), axis=-1, keepdims=True)
        xn = (x - mu) * lax.rsqrt(var + eps)
        xm = xn * g_ref[...].astype(jnp.float32) + bt_ref[...].astype(jnp.float32)
        xm_ref[...] = xm.astype(jnp.bfloat16)

    y = lax.dot_general(xm_ref[...], w_ref[...].astype(jnp.bfloat16),
                        dimension_numbers=(((1,), (0,)), ((), ())),
                        preferred_element_type=jnp.float32)
    y = y + b_ref[...].astype(jnp.float32)
    if gelu:
        y = _gelu(y)
    o_ref[...] = y.astype(o_ref.dtype)


def lnmod_linear(x, gamma, beta, w_t, b, gelu=False, eps=1e-5,
                 out_dtype=jnp.bfloat16):
    """(LN(x) * gamma + beta) @ w_t + b  [+ GELU];  x: (B,S,K), gamma/beta: (B,E)."""
    B, S, K = x.shape
    N = w_t.shape[1]
    ts = _pick_tile(S, _DEV["ts"], 8)
    tn = _pick_tile(N, _DEV["tn"], 128)
    g3 = gamma.reshape(B, 1, K)
    bt3 = beta.reshape(B, 1, K)
    b2 = b.reshape(1, N)
    return pl.pallas_call(
        functools.partial(_lnmod_linear_kernel, eps=eps, gelu=gelu),
        out_shape=jax.ShapeDtypeStruct((B, S, N), out_dtype),
        grid=(B, S // ts, N // tn),
        in_specs=[
            pl.BlockSpec((None, ts, K), lambda bi, si, ni: (bi, si, 0)),
            pl.BlockSpec((None, 1, K), lambda bi, si, ni: (bi, 0, 0)),
            pl.BlockSpec((None, 1, K), lambda bi, si, ni: (bi, 0, 0)),
            pl.BlockSpec((K, tn), lambda bi, si, ni: (0, ni)),
            pl.BlockSpec((1, tn), lambda bi, si, ni: (0, ni)),
        ],
        out_specs=pl.BlockSpec((None, ts, tn), lambda bi, si, ni: (bi, si, ni)),
        scratch_shapes=[pltpu.VMEM((ts, K), jnp.bfloat16)],
        compiler_params=pltpu.CompilerParams(
            dimension_semantics=("parallel", "parallel", "arbitrary"),
            vmem_limit_bytes=_VMEM_LIMIT),
    )(x, g3, bt3, w_t, b2)


# ------------------------- fused linear + scaled residual add ------------------------

def _linear_residual_kernel(y_ref, w_ref, b_ref, r_ref, a_ref, o_ref):
    # out = residual + (y @ w + b) * alpha   (residual stream stays f32)
    z = lax.dot_general(y_ref[...].astype(jnp.bfloat16),
                        w_ref[...].astype(jnp.bfloat16),
                        dimension_numbers=(((1,), (0,)), ((), ())),
                        preferred_element_type=jnp.float32)
    z = z + b_ref[...].astype(jnp.float32)
    out = r_ref[...].astype(jnp.float32) + z * a_ref[...].astype(jnp.float32)
    o_ref[...] = out.astype(o_ref.dtype)


def linear_residual(y, w_t, b, res, alpha):
    """res + (y @ w_t + b) * alpha;  y: (B,S,K), res: (B,S,N), alpha: (B,N)."""
    B, S, K = y.shape
    N = w_t.shape[1]
    ts = _pick_tile(S, _DEV["ts"], 8)
    tn = _pick_tile(N, _DEV["tn"], 128)
    a3 = alpha.reshape(B, 1, N)
    b2 = b.reshape(1, N)
    return pl.pallas_call(
        _linear_residual_kernel,
        out_shape=jax.ShapeDtypeStruct((B, S, N), res.dtype),
        grid=(B, S // ts, N // tn),
        in_specs=[
            pl.BlockSpec((None, ts, K), lambda bi, si, ni: (bi, si, 0)),
            pl.BlockSpec((K, tn), lambda bi, si, ni: (0, ni)),
            pl.BlockSpec((1, tn), lambda bi, si, ni: (0, ni)),
            pl.BlockSpec((None, ts, tn), lambda bi, si, ni: (bi, si, ni)),
            pl.BlockSpec((None, 1, tn), lambda bi, si, ni: (bi, 0, ni)),
        ],
        out_specs=pl.BlockSpec((None, ts, tn), lambda bi, si, ni: (bi, si, ni)),
        input_output_aliases={3: 0},   # residual input aliases the output buffer
        compiler_params=pltpu.CompilerParams(
            dimension_semantics=("parallel", "parallel", "parallel"),
            vmem_limit_bytes=_VMEM_LIMIT),
    )(y, w_t, b2, res, a3)


# ----------------------------------- attention ---------------------------------------

def _attn_kernel(qkv_ref, o_ref):
    # qkv block: (3, S, Dh) bf16 for one (batch, head); q already pre-scaled by
    # 1/sqrt(Dh) (folded into the QKV projection weights at prepare time).
    qkv = qkv_ref[...]
    q, k, v = qkv[0], qkv[1], qkv[2]
    s = lax.dot_general(q, k, dimension_numbers=(((1,), (1,)), ((), ())),
                        preferred_element_type=jnp.float32)            # (S, S) f32
    s = s - jnp.max(s, axis=-1, keepdims=True)
    p = jnp.exp(s)
    p = p * pl.reciprocal(jnp.sum(p, axis=-1, keepdims=True), approx=True)
    o = jnp.dot(p.astype(jnp.bfloat16), v, preferred_element_type=jnp.float32)
    o_ref[...] = o.astype(o_ref.dtype)


def attention(qkv_heads):
    """Softmax attention over a head-major (B, 3, H, S, Dh) buffer -> (B, H, S, Dh)."""
    # TODO(synk): for long sequences switch to a flash-style online-softmax loop
    # over a KV grid axis (bounds the (S,S) f32 score tile on v7x's 64 MiB VMEM).
    B, _, H, S, Dh = qkv_heads.shape
    return pl.pallas_call(
        _attn_kernel,
        out_shape=jax.ShapeDtypeStruct((B, H, S, Dh), qkv_heads.dtype),
        grid=(B, H),
        in_specs=[pl.BlockSpec((None, 3, None, S, Dh),
                               lambda b, h: (b, 0, h, 0, 0))],
        out_specs=pl.BlockSpec((None, None, S, Dh), lambda b, h: (b, h, 0, 0)),
        compiler_params=pltpu.CompilerParams(
            dimension_semantics=("parallel", "parallel"),
            vmem_limit_bytes=_VMEM_LIMIT),
    )(qkv_heads)


# --------------------------------- model assembly ------------------------------------

def encoder_block(x, c6, p, num_heads):
    # c6: (B, 6E) adaLN parameters for this layer (torch .chunk(6, -1) order).
    B, S, E = x.shape
    Dh = E // num_heads
    alpha1, beta1, gamma1, alpha2, beta2, gamma2 = [
        c6[:, i * E:(i + 1) * E] for i in range(6)]

    # attention branch: LN+modulate fused into the QKV projection (bf16 output)
    qkv = lnmod_linear(x, gamma1, beta1, p['in_w_t'], p['in_b'])        # (B,S,3E) bf16
    # head-major layout -> tile-aligned (S, Dh) per-head blocks, (B, H) grid
    qkv_h = qkv.reshape(B, S, 3, num_heads, Dh).transpose(0, 2, 3, 1, 4)
    attn = attention(qkv_h)                                             # (B,H,S,Dh)
    attn = attn.transpose(0, 2, 1, 3).reshape(B, S, E)                  # (B,S,E) bf16
    x = linear_residual(attn, p['out_w_t'], p['out_b'], x, alpha1)      # out_proj + residual

    # MLP branch: LN+modulate fused into fc1 (+GELU); fc2 fused with residual
    h = lnmod_linear(x, gamma2, beta2, p['fc1_w_t'], p['fc1_b'], gelu=True)
    x = linear_residual(h, p['fc2_w_t'], p['fc2_b'], x, alpha2)
    return x


def transformer_forward(params, x, t, cls, cfg, mask=None):
    # TODO(synk): TimeEmbedding / ClassEmbedding / LearnablePositionalEncoding2D
    # are not defined in the reference; modeled as learnable lookup tables and a
    # learnable (S, E) positional parameter (gathers are glue, done in JAX).
    t_emb = jnp.take(params['time_table'], t, axis=0)       # (B, cond_dim)
    cls_emb = jnp.take(params['cls_table'], cls, axis=0)    # (B, cond_dim)
    if mask is not None:
        cls_emb = jnp.where(mask[:, None], 0.0, cls_emb)
    cond = t_emb + cls_emb

    h = linear(x, params['proj_in_w_t'], params['proj_in_b'])
    h = h + params['pos_emb'][None, :, :]

    # one batched matmul computes the adaLN cond params for all layers at once
    E = cfg['emb_dim']
    c_all = linear(cond, params['cond_w_t'], params['cond_b'])          # (B, L*6E)
    for li, lp in enumerate(params['layers']):
        c6 = c_all[:, li * 6 * E:(li + 1) * 6 * E]
        h = encoder_block(h, c6, lp, cfg['num_heads'])

    return linear(h, params['proj_out_w_t'], params['proj_out_b'])


# ------------------------------------- params ----------------------------------------

def init_params(key, cfg):
    """PyTorch-convention f32 parameters (Linear weights are (out, in))."""
    E, I, C = cfg['emb_dim'], cfg['inp_dim'], cfg['cond_dim']
    Mlp, L = cfg['mlp_dim'], cfg['num_layers']
    S = cfg['n_patch'] ** 2
    keys = iter(jax.random.split(key, 16 + 16 * L))

    def w(shape, scale=0.05):
        return (scale * jax.random.normal(next(keys), shape)).astype(jnp.float32)

    params = {
        'time_table': w((cfg['t_max'], C)),
        'cls_table':  w((cfg['n_class'], C)),
        'pos_emb':    w((S, E)),
        'proj_in_w':  w((E, I)),  'proj_in_b':  w((E,)),
        'proj_out_w': w((I, E)),  'proj_out_b': w((I,)),
        'layers': [],
    }
    for _ in range(L):
        params['layers'].append({
            'cond_w': w((6 * E, C)), 'cond_b': w((6 * E,)),
            'in_w':   w((3 * E, E)), 'in_b':   w((3 * E,)),
            'out_w':  w((E, E)),     'out_b':  w((E,)),
            'fc1_w':  w((Mlp, E)),   'fc1_b':  w((Mlp,)),
            'fc2_w':  w((E, Mlp)),   'fc2_b':  w((E,)),
        })
    return params


def prepare_params(params, cfg):
    """One-time layout prep: transpose Linear weights to (K, N), cast matmul
    weights to bf16 (f32 accumulation in-kernel), fold the 1/sqrt(Dh) attention
    scale into the q-slice of the QKV projection, and stack all layers' cond
    projection weights so the adaLN params come from a single matmul/forward."""
    wdt = jnp.bfloat16
    E, H = cfg['emb_dim'], cfg['num_heads']
    q_scale = 1.0 / math.sqrt(E // H)
    col_scale = jnp.concatenate([jnp.full((E,), q_scale, jnp.float32),
                                 jnp.ones((2 * E,), jnp.float32)])
    prep = {
        'time_table': params['time_table'],
        'cls_table':  params['cls_table'],
        'pos_emb':    params['pos_emb'],
        'proj_in_w_t':  params['proj_in_w'].T.astype(wdt),
        'proj_in_b':    params['proj_in_b'],
        'proj_out_w_t': params['proj_out_w'].T.astype(wdt),
        'proj_out_b':   params['proj_out_b'],
        'cond_w_t': jnp.concatenate([lp['cond_w'] for lp in params['layers']],
                                    axis=0).T.astype(wdt),
        'cond_b':   jnp.concatenate([lp['cond_b'] for lp in params['layers']], axis=0),
        'layers': [],
    }
    for lp in params['layers']:
        prep['layers'].append({
            'in_w_t':  (lp['in_w'].T * col_scale[None, :]).astype(wdt),
            'in_b':    lp['in_b'] * col_scale,
            'out_w_t': lp['out_w'].T.astype(wdt), 'out_b': lp['out_b'],
            'fc1_w_t': lp['fc1_w'].T.astype(wdt), 'fc1_b': lp['fc1_b'],
            'fc2_w_t': lp['fc2_w'].T.astype(wdt), 'fc2_b': lp['fc2_b'],
        })
    return prep


if __name__ == "__main__":
    cfg = dict(inp_dim=8, emb_dim=32, cond_dim=16, num_heads=4, mlp_dim=64,
               num_layers=2, dropout=0.0,            # dropout: eval-mode no-op
               t_max=10, n_class=5, n_patch=4)
    key = jax.random.PRNGKey(0)
    pkey, xkey, tkey, ckey = jax.random.split(key, 4)
    params = prepare_params(init_params(pkey, cfg), cfg)

    B, S = 2, cfg['n_patch'] ** 2                     # seq = n_patch^2 = 16
    x = jax.random.normal(xkey, (B, S, cfg['inp_dim']), dtype=jnp.float32)
    t = jax.random.randint(tkey, (B,), 0, cfg['t_max'])
    cls = jax.random.randint(ckey, (B,), 0, cfg['n_class'])

    fwd = jax.jit(functools.partial(transformer_forward, cfg=cfg))
    out = jax.block_until_ready(fwd(params, x, t, cls))
    assert out.shape == (B, S, cfg['inp_dim'])
    assert bool(jnp.all(jnp.isfinite(out)))
    print("KERNEL_OK")
</pallas_src>

<mosaic_0001>
module attributes {stable_mosaic.version = 11 : i64} {
  func.func @_matmul_kernel(%arg0: i32, %arg1: i32, %arg2: i32, %arg3: memref<32x8xf32, #tpu.memory_space<vmem>>, %arg4: memref<8x32xbf16, #tpu.memory_space<vmem>>, %arg5: memref<1x32xf32, #tpu.memory_space<vmem>>, %arg6: memref<32x32xf32, #tpu.memory_space<vmem>>, %arg7: memref<32x32xf32, #tpu.memory_space<vmem>>) attributes {dimension_semantics = [#tpu.dimension_semantics<parallel>, #tpu.dimension_semantics<parallel>, #tpu.dimension_semantics<arbitrary>], iteration_bounds = array<i64: 1, 1, 1>, scalar_prefetch = 0 : i64, scratch_operands = 1 : i64, tpu.core_type = #tpu.core_type<tc>, window_params = [{transform_indices = @transform_0, window_bounds = array<i64: 32, 8>}, {transform_indices = @transform_1, window_bounds = array<i64: 8, 32>}, {transform_indices = @transform_2, window_bounds = array<i64: 1, 32>}, {transform_indices = @transform_3, window_bounds = array<i64: 32, 32>}]} {
    %c0_i32 = arith.constant 0 : i32
    %0 = arith.cmpi eq, %arg2, %c0_i32 : i32
    %1 = arith.extui %0 : i1 to i32
    %c0_i32_0 = arith.constant 0 : i32
    %2 = arith.cmpi ne, %1, %c0_i32_0 : i32
    scf.if %2 {
      %cst_10 = arith.constant 0.000000e+00 : f32
      %13 = vector.broadcast %cst_10 : f32 to vector<32x32xf32>
      %c0_11 = arith.constant 0 : index
      %c0_12 = arith.constant 0 : index
      %14 = vector.load %arg7[%c0_11, %c0_12] : memref<32x32xf32, #tpu.memory_space<vmem>>, vector<32x32xf32>
      tpu.vector_store %arg7[%c0_11, %c0_12], %13 {strides = array<i32>} : memref<32x32xf32, #tpu.memory_space<vmem>>, vector<32x32xf32>,
    } else {
    }
    %c0 = arith.constant 0 : index
    %c0_1 = arith.constant 0 : index
    %3 = vector.load %arg7[%c0, %c0_1] : memref<32x32xf32, #tpu.memory_space<vmem>>, vector<32x32xf32>
    %c0_2 = arith.constant 0 : index
    %c0_3 = arith.constant 0 : index
    %4 = vector.load %arg3[%c0_2, %c0_3] : memref<32x8xf32, #tpu.memory_space<vmem>>, vector<32x8xf32>
    %5 = arith.truncf %4 : vector<32x8xf32> to vector<32x8xbf16>
    %c0_4 = arith.constant 0 : index
    %c0_5 = arith.constant 0 : index
    %6 = vector.load %arg4[%c0_4, %c0_5] : memref<8x32xbf16, #tpu.memory_space<vmem>>, vector<8x32xbf16>
    %cst = arith.constant dense<0.000000e+00> : vector<32x32xf32>
    %7 = tpu.matmul %5, %6, %cst {dimension_numbers = #tpu.dot_dimension_numbers<[1], [0], [0], [1], [0, 0, 1, 1], [], []>} : vector<32x8xbf16>, vector<8x32xbf16>, vector<32x32xf32> -> vector<32x32xf32>
    %8 = arith.addf %3, %7 : vector<32x32xf32>
    %c0_6 = arith.constant 0 : index
    %c0_7 = arith.constant 0 : index
    %9 = vector.load %arg7[%c0_6, %c0_7] : memref<32x32xf32, #tpu.memory_space<vmem>>, vector<32x32xf32>
    tpu.vector_store %arg7[%c0_6, %c0_7], %8 {strides = array<i32>} : memref<32x32xf32, #tpu.memory_space<vmem>>, vector<32x32xf32>,
    %c0_i32_8 = arith.constant 0 : i32
    %10 = arith.cmpi eq, %arg2, %c0_i32_8 : i32
    %11 = arith.extui %10 : i1 to i32
    %c0_i32_9 = arith.constant 0 : i32
    %12 = arith.cmpi ne, %11, %c0_i32_9 : i32
    scf.if %12 {
      %c0_10 = arith.constant 0 : index
      %c0_11 = arith.constant 0 : index
      %13 = vector.load %arg7[%c0_10, %c0_11] : memref<32x32xf32, #tpu.memory_space<vmem>>, vector<32x32xf32>
      %c0_12 = arith.constant 0 : index
      %c0_13 = arith.constant 0 : index
      %14 = vector.load %arg5[%c0_12, %c0_13] : memref<1x32xf32, #tpu.memory_space<vmem>>, vector<1x32xf32>
      %15 = vector.broadcast %14 : vector<1x32xf32> to vector<32x32xf32>
      %16 = arith.addf %13, %15 : vector<32x32xf32>
      %c0_14 = arith.constant 0 : index
      %c0_15 = arith.constant 0 : index
      %17 = vector.load %arg6[%c0_14, %c0_15] : memref<32x32xf32, #tpu.memory_space<vmem>>, vector<32x32xf32>
      tpu.vector_store %arg6[%c0_14, %c0_15], %16 {strides = array<i32>} : memref<32x32xf32, #tpu.memory_space<vmem>>, vector<32x32xf32>,
    } else {
    }
    return
  }
  func.func @transform_0(%arg0: i32, %arg1: i32, %arg2: i32) -> (i32, i32) {
    %c0_i32 = arith.constant 0 : i32
    return %arg0, %arg2 : i32, i32
  }
  func.func @transform_1(%arg0: i32, %arg1: i32, %arg2: i32) -> (i32, i32) {
    %c0_i32 = arith.constant 0 : i32
    return %arg2, %arg1 : i32, i32
  }
  func.func @transform_2(%arg0: i32, %arg1: i32, %arg2: i32) -> (i32, i32) {
    %c0_i32 = arith.constant 0 : i32
    %c0_i32_0 = arith.constant 0 : i32
    return %c0_i32, %arg1 : i32, i32
  }
  func.func @transform_3(%arg0: i32, %arg1: i32, %arg2: i32) -> (i32, i32) {
    %c0_i32 = arith.constant 0 : i32
    return %arg0, %arg1 : i32, i32
  }
}

module attributes {stable_mosaic.version = 11 : i64} {
  func.func @_matmul_kernel(%arg0: i32, %arg1: i32, %arg2: i32, %arg3: memref<2x16xf32, #tpu.memory_space<vmem>>, %arg4: memref<16x384xbf16, #tpu.memory_space<vmem>>, %arg5: memref<1x384xf32, #tpu.memory_space<vmem>>, %arg6: memref<2x384xf32, #tpu.memory_space<vmem>>, %arg7: memref<2x384xf32, #tpu.memory_space<vmem>>) attributes {dimension_semantics = [#tpu.dimension_semantics<parallel>, #tpu.dimension_semantics<parallel>, #tpu.dimension_semantics<arbitrary>], iteration_bounds = array<i64: 1, 1, 1>, scalar_prefetch = 0 : i64, scratch_operands = 1 : i64, tpu.core_type = #tpu.core_type<tc>, window_params = [{transform_indices = @transform_0, window_bounds = array<i64: 2, 16>}, {transform_indices = @transform_1, window_bounds = array<i64: 16, 384>}, {transform_indices = @transform_2, window_bounds = array<i64: 1, 384>}, {transform_indices = @transform_3, window_bounds = array<i64: 2, 384>}]} {
    %c0_i32 = arith.constant 0 : i32
    %0 = arith.cmpi eq, %arg2, %c0_i32 : i32
    %1 = arith.extui %0 : i1 to i32
    %c0_i32_0 = arith.constant 0 : i32
    %2 = arith.cmpi ne, %1, %c0_i32_0 : i32
    scf.if %2 {
      %cst_10 = arith.constant 0.000000e+00 : f32
      %13 = vector.broadcast %cst_10 : f32 to vector<2x384xf32>
      %c0_11 = arith.constant 0 : index
      %c0_12 = arith.constant 0 : index
      %14 = vector.load %arg7[%c0_11, %c0_12] : memref<2x384xf32, #tpu.memory_space<vmem>>, vector<2x384xf32>
      tpu.vector_store %arg7[%c0_11, %c0_12], %13 {strides = array<i32>} : memref<2x384xf32, #tpu.memory_space<vmem>>, vector<2x384xf32>,
    } else {
    }
    %c0 = arith.constant 0 : index
    %c0_1 = arith.constant 0 : index
    %3 = vector.load %arg7[%c0, %c0_1] : memref<2x384xf32, #tpu.memory_space<vmem>>, vector<2x384xf32>
    %c0_2 = arith.constant 0 : index
    %c0_3 = arith.constant 0 : index
    %4 = vector.load %arg3[%c0_2, %c0_3] : memref<2x16xf32, #tpu.memory_space<vmem>>, vector<2x16xf32>
    %5 = arith.truncf %4 : vector<2x16xf32> to vector<2x16xbf16>
    %c0_4 = arith.constant 0 : index
    %c0_5 = arith.constant 0 : index
    %6 = vector.load %arg4[%c0_4, %c0_5] : memref<16x384xbf16, #tpu.memory_space<vmem>>, vector<16x384xbf16>
    %cst = arith.constant dense<0.000000e+00> : vector<2x384xf32>
    %7 = tpu.matmul %5, %6, %cst {dimension_numbers = #tpu.dot_dimension_numbers<[1], [0], [0], [1], [0, 0, 1, 1], [], []>} : vector<2x16xbf16>, vector<16x384xbf16>, vector<2x384xf32> -> vector<2x384xf32>
    %8 = arith.addf %3, %7 : vector<2x384xf32>
    %c0_6 = arith.constant 0 : index
    %c0_7 = arith.constant 0 : index
    %9 = vector.load %arg7[%c0_6, %c0_7] : memref<2x384xf32, #tpu.memory_space<vmem>>, vector<2x384xf32>
    tpu.vector_store %arg7[%c0_6, %c0_7], %8 {strides = array<i32>} : memref<2x384xf32, #tpu.memory_space<vmem>>, vector<2x384xf32>,
    %c0_i32_8 = arith.constant 0 : i32
    %10 = arith.cmpi eq, %arg2, %c0_i32_8 : i32
    %11 = arith.extui %10 : i1 to i32
    %c0_i32_9 = arith.constant 0 : i32
    %12 = arith.cmpi ne, %11, %c0_i32_9 : i32
    scf.if %12 {
      %c0_10 = arith.constant 0 : index
      %c0_11 = arith.constant 0 : index
      %13 = vector.load %arg7[%c0_10, %c0_11] : memref<2x384xf32, #tpu.memory_space<vmem>>, vector<2x384xf32>
      %c0_12 = arith.constant 0 : index
      %c0_13 = arith.constant 0 : index
      %14 = vector.load %arg5[%c0_12, %c0_13] : memref<1x384xf32, #tpu.memory_space<vmem>>, vector<1x384xf32>
      %15 = vector.broadcast %14 : vector<1x384xf32> to vector<2x384xf32>
      %16 = arith.addf %13, %15 : vector<2x384xf32>
      %c0_14 = arith.constant 0 : index
      %c0_15 = arith.constant 0 : index
      %17 = vector.load %arg6[%c0_14, %c0_15] : memref<2x384xf32, #tpu.memory_space<vmem>>, vector<2x384xf32>
      tpu.vector_store %arg6[%c0_14, %c0_15], %16 {strides = array<i32>} : memref<2x384xf32, #tpu.memory_space<vmem>>, vector<2x384xf32>,
    } else {
    }
    return
  }
  func.func @transform_0(%arg0: i32, %arg1: i32, %arg2: i32) -> (i32, i32) {
    %c0_i32 = arith.constant 0 : i32
    return %arg0, %arg2 : i32, i32
  }
  func.func @transform_1(%arg0: i32, %arg1: i32, %arg2: i32) -> (i32, i32) {
    %c0_i32 = arith.constant 0 : i32
    return %arg2, %arg1 : i32, i32
  }
  func.func @transform_2(%arg0: i32, %arg1: i32, %arg2: i32) -> (i32, i32) {
    %c0_i32 = arith.constant 0 : i32
    %c0_i32_0 = arith.constant 0 : i32
    return %c0_i32, %arg1 : i32, i32
  }
  func.func @transform_3(%arg0: i32, %arg1: i32, %arg2: i32) -> (i32, i32) {
    %c0_i32 = arith.constant 0 : i32
    return %arg0, %arg1 : i32, i32
  }
}

module attributes {stable_mosaic.version = 11 : i64} {
  func.func @_lnmod_linear_kernel(%arg0: i32, %arg1: i32, %arg2: i32, %arg3: memref<1x16x32xf32, #tpu.memory_space<vmem>>, %arg4: memref<1x1x32xf32, #tpu.memory_space<vmem>>, %arg5: memref<1x1x32xf32, #tpu.memory_space<vmem>>, %arg6: memref<32x96xbf16, #tpu.memory_space<vmem>>, %arg7: memref<1x96xf32, #tpu.memory_space<vmem>>, %arg8: memref<1x16x96xbf16, #tpu.memory_space<vmem>>, %arg9: memref<16x32xbf16, #tpu.memory_space<vmem>>) attributes {dimension_semantics = [#tpu.dimension_semantics<parallel>, #tpu.dimension_semantics<parallel>, #tpu.dimension_semantics<arbitrary>], iteration_bounds = array<i64: 2, 1, 1>, scalar_prefetch = 0 : i64, scratch_operands = 1 : i64, tpu.core_type = #tpu.core_type<tc>, window_params = [{transform_indices = @transform_0, window_bounds = array<i64: 1, 16, 32>}, {transform_indices = @transform_1, window_bounds = array<i64: 1, 1, 32>}, {transform_indices = @transform_2, window_bounds = array<i64: 1, 1, 32>}, {transform_indices = @transform_3, window_bounds = array<i64: 32, 96>}, {transform_indices = @transform_4, window_bounds = array<i64: 1, 96>}, {transform_indices = @transform_5, window_bounds = array<i64: 1, 16, 96>}]} {
    %c0_i32 = arith.constant 0 : i32
    %0 = arith.cmpi eq, %arg2, %c0_i32 : i32
    %1 = arith.extui %0 : i1 to i32
    %c0_i32_0 = arith.constant 0 : i32
    %2 = arith.cmpi ne, %1, %c0_i32_0 : i32
    scf.if %2 {
      %c0_9 = arith.constant 0 : index
      %c0_10 = arith.constant 0 : index
      %c0_11 = arith.constant 0 : index
      %13 = vector.load %arg3[%c0_9, %c0_10, %c0_11] : memref<1x16x32xf32, #tpu.memory_space<vmem>>, vector<1x16x32xf32>
      %14 = vector.shape_cast %13 : vector<1x16x32xf32> to vector<16x32xf32>
      %cst_12 = arith.constant dense<0.000000e+00> : vector<16xf32>
      %15 = vector.multi_reduction <add>, %14, %cst_12 [1] : vector<16x32xf32> to vector<16xf32>
      %16 = vector.shape_cast %15 : vector<16xf32> to vector<16x1xf32>
      %cst_13 = arith.constant 3.200000e+01 : f32
      %17 = vector.broadcast %cst_13 : f32 to vector<16x1xf32>
      %18 = arith.divf %16, %17 : vector<16x1xf32>
      %19 = vector.broadcast %18 : vector<16x1xf32> to vector<16x32xf32>
      %20 = arith.subf %14, %19 : vector<16x32xf32>
      %21 = arith.mulf %20, %20 : vector<16x32xf32>
      %cst_14 = arith.constant dense<0.000000e+00> : vector<16xf32>
      %22 = vector.multi_reduction <add>, %21, %cst_14 [1] : vector<16x32xf32> to vector<16xf32>
      %23 = vector.shape_cast %22 : vector<16xf32> to vector<16x1xf32>
      %cst_15 = arith.constant 3.200000e+01 : f32
      %24 = vector.broadcast %cst_15 : f32 to vector<16x1xf32>
      %25 = arith.divf %23, %24 : vector<16x1xf32>
      %26 = vector.broadcast %18 : vector<16x1xf32> to vector<16x32xf32>
      %27 = arith.subf %14, %26 : vector<16x32xf32>
      %cst_16 = arith.constant 9.99999974E-6 : f32
      %28 = vector.broadcast %cst_16 : f32 to vector<16x1xf32>
      %29 = arith.addf %25, %28 : vector<16x1xf32>
      %30 = math.rsqrt %29 : vector<16x1xf32>
      %31 = vector.broadcast %30 : vector<16x1xf32> to vector<16x32xf32>
      %32 = arith.mulf %27, %31 : vector<16x32xf32>
      %c0_17 = arith.constant 0 : index
      %c0_18 = arith.constant 0 : index
      %c0_19 = arith.constant 0 : index
      %33 = vector.load %arg4[%c0_17, %c0_18, %c0_19] : memref<1x1x32xf32, #tpu.memory_space<vmem>>, vector<1x1x32xf32>
      %34 = vector.shape_cast %33 : vector<1x1x32xf32> to vector<1x32xf32>
      %35 = vector.broadcast %34 : vector<1x32xf32> to vector<16x32xf32>
      %36 = arith.mulf %32, %35 : vector<16x32xf32>
      %c0_20 = arith.constant 0 : index
      %c0_21 = arith.constant 0 : index
      %c0_22 = arith.constant 0 : index
      %37 = vector.load %arg5[%c0_20, %c0_21, %c0_22] : memref<1x1x32xf32, #tpu.memory_space<vmem>>, vector<1x1x32xf32>
      %38 = vector.shape_cast %37 : vector<1x1x32xf32> to vector<1x32xf32>
      %39 = vector.broadcast %38 : vector<1x32xf32> to vector<16x32xf32>
      %40 = arith.addf %36, %39 : vector<16x32xf32>
      %41 = arith.truncf %40 : vector<16x32xf32> to vector<16x32xbf16>
      %c0_23 = arith.constant 0 : index
      %c0_24 = arith.constant 0 : index
      %42 = vector.load %arg9[%c0_23, %c0_24] : memref<16x32xbf16, #tpu.memory_space<vmem>>, vector<16x32xbf16>
      tpu.vector_store %arg9[%c0_23, %c0_24], %41 {strides = array<i32>} : memref<16x32xbf16, #tpu.memory_space<vmem>>, vector<16x32xbf16>,
    } else {
    }
    %c0 = arith.constant 0 : index
    %c0_1 = arith.constant 0 : index
    %3 = vector.load %arg9[%c0, %c0_1] : memref<16x32xbf16, #tpu.memory_space<vmem>>, vector<16x32xbf16>
    %c0_2 = arith.constant 0 : index
    %c0_3 = arith.constant 0 : index
    %4 = vector.load %arg6[%c0_2, %c0_3] : memref<32x96xbf16, #tpu.memory_space<vmem>>, vector<32x96xbf16>
    %cst = arith.constant dense<0.000000e+00> : vector<16x96xf32>
    %5 = tpu.matmul %3, %4, %cst {dimension_numbers = #tpu.dot_dimension_numbers<[1], [0], [0], [1], [0, 0, 1, 1], [], []>} : vector<16x32xbf16>, vector<32x96xbf16>, vector<16x96xf32> -> vector<16x96xf32>
    %c0_4 = arith.constant 0 : index
    %c0_5 = arith.constant 0 : index
    %6 = vector.load %arg7[%c0_4, %c0_5] : memref<1x96xf32, #tpu.memory_space<vmem>>, vector<1x96xf32>
    %7 = vector.broadcast %6 : vector<1x96xf32> to vector<16x96xf32>
    %8 = arith.addf %5, %7 : vector<16x96xf32>
    %9 = arith.truncf %8 : vector<16x96xf32> to vector<16x96xbf16>
    %c0_6 = arith.constant 0 : index
    %c0_7 = arith.constant 0 : index
    %c0_8 = arith.constant 0 : index
    %10 = vector.load %arg8[%c0_6, %c0_7, %c0_8] : memref<1x16x96xbf16, #tpu.memory_space<vmem>>, vector<1x16x96xbf16>
    %11 = vector.shape_cast %10 : vector<1x16x96xbf16> to vector<16x96xbf16>
    %12 = vector.shape_cast %9 : vector<16x96xbf16> to vector<1x16x96xbf16>
    tpu.vector_store %arg8[%c0_6, %c0_7, %c0_8], %12 {strides = array<i32>} : memref<1x16x96xbf16, #tpu.memory_space<vmem>>, vector<1x16x96xbf16>,
    return
  }
  func.func @transform_0(%arg0: i32, %arg1: i32, %arg2: i32) -> (i32, i32, i32) {
    %c0_i32 = arith.constant 0 : i32
    %c0_i32_0 = arith.constant 0 : i32
    return %arg0, %arg1, %c0_i32 : i32, i32, i32
  }
  func.func @transform_1(%arg0: i32, %arg1: i32, %arg2: i32) -> (i32, i32, i32) {
    %c0_i32 = arith.constant 0 : i32
    %c0_i32_0 = arith.constant 0 : i32
    %c0_i32_1 = arith.constant 0 : i32
    return %arg0, %c0_i32, %c0_i32_0 : i32, i32, i32
  }
  func.func @transform_2(%arg0: i32, %arg1: i32, %arg2: i32) -> (i32, i32, i32) {
    %c0_i32 = arith.constant 0 : i32
    %c0_i32_0 = arith.constant 0 : i32
    %c0_i32_1 = arith.constant 0 : i32
    return %arg0, %c0_i32, %c0_i32_0 : i32, i32, i32
  }
  func.func @transform_3(%arg0: i32, %arg1: i32, %arg2: i32) -> (i32, i32) {
    %c0_i32 = arith.constant 0 : i32
    %c0_i32_0 = arith.constant 0 : i32
    return %c0_i32, %arg2 : i32, i32
  }
  func.func @transform_4(%arg0: i32, %arg1: i32, %arg2: i32) -> (i32, i32) {
    %c0_i32 = arith.constant 0 : i32
    %c0_i32_0 = arith.constant 0 : i32
    return %c0_i32, %arg2 : i32, i32
  }
  func.func @transform_5(%arg0: i32, %arg1: i32, %arg2: i32) -> (i32, i32, i32) {
    %c0_i32 = arith.constant 0 : i32
    return %arg0, %arg1, %arg2 : i32, i32, i32
  }
}

module attributes {stable_mosaic.version = 11 : i64} {
  func.func @_attn_kernel(%arg0: i32, %arg1: i32, %arg2: memref<1x3x1x16x8xbf16, #tpu.memory_space<vmem>>, %arg3: memref<1x1x16x8xbf16, #tpu.memory_space<vmem>>) attributes {dimension_semantics = [#tpu.dimension_semantics<parallel>, #tpu.dimension_semantics<parallel>], iteration_bounds = array<i64: 2, 4>, scalar_prefetch = 0 : i64, scratch_operands = 0 : i64, tpu.core_type = #tpu.core_type<tc>, window_params = [{transform_indices = @transform_0, window_bounds = array<i64: 1, 3, 1, 16, 8>}, {transform_indices = @transform_1, window_bounds = array<i64: 1, 1, 16, 8>}]} {
    %c0 = arith.constant 0 : index
    %c0_0 = arith.constant 0 : index
    %c0_1 = arith.constant 0 : index
    %c0_2 = arith.constant 0 : index
    %c0_3 = arith.constant 0 : index
    %0 = vector.load %arg2[%c0, %c0_0, %c0_1, %c0_2, %c0_3] : memref<1x3x1x16x8xbf16, #tpu.memory_space<vmem>>, vector<1x3x1x16x8xbf16>
    %1 = vector.shape_cast %0 : vector<1x3x1x16x8xbf16> to vector<3x16x8xbf16>
    %2 = vector.extract_strided_slice %1 {offsets = [0, 0, 0], sizes = [1, 16, 8], strides = [1, 1, 1]} : vector<3x16x8xbf16> to vector<1x16x8xbf16>
    %3 = vector.shape_cast %2 : vector<1x16x8xbf16> to vector<16x8xbf16>
    %4 = vector.extract_strided_slice %1 {offsets = [1, 0, 0], sizes = [1, 16, 8], strides = [1, 1, 1]} : vector<3x16x8xbf16> to vector<1x16x8xbf16>
    %5 = vector.shape_cast %4 : vector<1x16x8xbf16> to vector<16x8xbf16>
    %6 = vector.extract_strided_slice %1 {offsets = [2, 0, 0], sizes = [1, 16, 8], strides = [1, 1, 1]} : vector<3x16x8xbf16> to vector<1x16x8xbf16>
    %7 = vector.shape_cast %6 : vector<1x16x8xbf16> to vector<16x8xbf16>
    %cst = arith.constant dense<0.000000e+00> : vector<16x16xf32>
    %8 = tpu.matmul %3, %5, %cst {dimension_numbers = #tpu.dot_dimension_numbers<[1], [1], [0], [0], [0, 0, 1, 0], [], []>} : vector<16x8xbf16>, vector<16x8xbf16>, vector<16x16xf32> -> vector<16x16xf32>
    %cst_4 = arith.constant dense<0xFF800000> : vector<16xf32>
    %9 = vector.multi_reduction <maximumf>, %8, %cst_4 [1] : vector<16x16xf32> to vector<16xf32>
    %10 = vector.shape_cast %9 : vector<16xf32> to vector<16x1xf32>
    %11 = vector.broadcast %10 : vector<16x1xf32> to vector<16x16xf32>
    %12 = arith.subf %8, %11 : vector<16x16xf32>
    %13 = math.exp %12 : vector<16x16xf32>
    %cst_5 = arith.constant dense<0.000000e+00> : vector<16xf32>
    %14 = vector.multi_reduction <add>, %13, %cst_5 [1] : vector<16x16xf32> to vector<16xf32>
    %15 = vector.shape_cast %14 : vector<16xf32> to vector<16x1xf32>
    %16 = tpu.reciprocal %15 {approx = true} : vector<16x1xf32> -> vector<16x1xf32>
    %17 = vector.broadcast %16 : vector<16x1xf32> to vector<16x16xf32>
    %18 = arith.mulf %13, %17 : vector<16x16xf32>
    %19 = arith.truncf %18 : vector<16x16xf32> to vector<16x16xbf16>
    %cst_6 = arith.constant dense<0.000000e+00> : vector<16x8xf32>
    %20 = tpu.matmul %19, %7, %cst_6 {dimension_numbers = #tpu.dot_dimension_numbers<[1], [0], [0], [1], [0, 0, 1, 1], [], []>} : vector<16x16xbf16>, vector<16x8xbf16>, vector<16x8xf32> -> vector<16x8xf32>
    %21 = arith.truncf %20 : vector<16x8xf32> to vector<16x8xbf16>
    %c0_7 = arith.constant 0 : index
    %c0_8 = arith.constant 0 : index
    %c0_9 = arith.constant 0 : index
    %c0_10 = arith.constant 0 : index
    %22 = vector.load %arg3[%c0_7, %c0_8, %c0_9, %c0_10] : memref<1x1x16x8xbf16, #tpu.memory_space<vmem>>, vector<1x1x16x8xbf16>
    %23 = vector.shape_cast %22 : vector<1x1x16x8xbf16> to vector<16x8xbf16>
    %24 = vector.shape_cast %21 : vector<16x8xbf16> to vector<1x1x16x8xbf16>
    tpu.vector_store %arg3[%c0_7, %c0_8, %c0_9, %c0_10], %24 {strides = array<i32>} : memref<1x1x16x8xbf16, #tpu.memory_space<vmem>>, vector<1x1x16x8xbf16>,
    return
  }
  func.func @transform_0(%arg0: i32, %arg1: i32) -> (i32, i32, i32, i32, i32) {
    %c0_i32 = arith.constant 0 : i32
    %c0_i32_0 = arith.constant 0 : i32
    %c0_i32_1 = arith.constant 0 : i32
    %c0_i32_2 = arith.constant 0 : i32
    return %arg0, %c0_i32, %arg1, %c0_i32_0, %c0_i32_1 : i32, i32, i32, i32, i32
  }
  func.func @transform_1(%arg0: i32, %arg1: i32) -> (i32, i32, i32, i32) {
    %c0_i32 = arith.constant 0 : i32
    %c0_i32_0 = arith.constant 0 : i32
    %c0_i32_1 = arith.constant 0 : i32
    return %arg0, %arg1, %c0_i32, %c0_i32_0 : i32, i32, i32, i32
  }
}

module attributes {stable_mosaic.version = 11 : i64} {
  func.func @_linear_residual_kernel(%arg0: i32, %arg1: i32, %arg2: i32, %arg3: memref<1x16x32xbf16, #tpu.memory_space<vmem>>, %arg4: memref<32x32xbf16, #tpu.memory_space<vmem>>, %arg5: memref<1x32xf32, #tpu.memory_space<vmem>>, %arg6: memref<1x16x32xf32, #tpu.memory_space<vmem>>, %arg7: memref<1x1x32xf32, #tpu.memory_space<vmem>>, %arg8: memref<1x16x32xf32, #tpu.memory_space<vmem>>) attributes {dimension_semantics = [#tpu.dimension_semantics<parallel>, #tpu.dimension_semantics<parallel>, #tpu.dimension_semantics<parallel>], iteration_bounds = array<i64: 2, 1, 1>, scalar_prefetch = 0 : i64, scratch_operands = 0 : i64, tpu.core_type = #tpu.core_type<tc>, window_params = [{transform_indices = @transform_0, window_bounds = array<i64: 1, 16, 32>}, {transform_indices = @transform_1, window_bounds = array<i64: 32, 32>}, {transform_indices = @transform_2, window_bounds = array<i64: 1, 32>}, {transform_indices = @transform_3, window_bounds = array<i64: 1, 16, 32>}, {transform_indices = @transform_4, window_bounds = array<i64: 1, 1, 32>}, {transform_indices = @transform_5, window_bounds = array<i64: 1, 16, 32>}]} {
    %c0 = arith.constant 0 : index
    %c0_0 = arith.constant 0 : index
    %c0_1 = arith.constant 0 : index
    %0 = vector.load %arg3[%c0, %c0_0, %c0_1] : memref<1x16x32xbf16, #tpu.memory_space<vmem>>, vector<1x16x32xbf16>
    %1 = vector.shape_cast %0 : vector<1x16x32xbf16> to vector<16x32xbf16>
    %c0_2 = arith.constant 0 : index
    %c0_3 = arith.constant 0 : index
    %2 = vector.load %arg4[%c0_2, %c0_3] : memref<32x32xbf16, #tpu.memory_space<vmem>>, vector<32x32xbf16>
    %cst = arith.constant dense<0.000000e+00> : vector<16x32xf32>
    %3 = tpu.matmul %1, %2, %cst {dimension_numbers = #tpu.dot_dimension_numbers<[1], [0], [0], [1], [0, 0, 1, 1], [], []>} : vector<16x32xbf16>, vector<32x32xbf16>, vector<16x32xf32> -> vector<16x32xf32>
    %c0_4 = arith.constant 0 : index
    %c0_5 = arith.constant 0 : index
    %4 = vector.load %arg5[%c0_4, %c0_5] : memref<1x32xf32, #tpu.memory_space<vmem>>, vector<1x32xf32>
    %5 = vector.broadcast %4 : vector<1x32xf32> to vector<16x32xf32>
    %6 = arith.addf %3, %5 : vector<16x32xf32>
    %c0_6 = arith.constant 0 : index
    %c0_7 = arith.constant 0 : index
    %c0_8 = arith.constant 0 : index
    %7 = vector.load %arg6[%c0_6, %c0_7, %c0_8] : memref<1x16x32xf32, #tpu.memory_space<vmem>>, vector<1x16x32xf32>
    %8 = vector.shape_cast %7 : vector<1x16x32xf32> to vector<16x32xf32>
    %c0_9 = arith.constant 0 : index
    %c0_10 = arith.constant 0 : index
    %c0_11 = arith.constant 0 : index
    %9 = vector.load %arg7[%c0_9, %c0_10, %c0_11] : memref<1x1x32xf32, #tpu.memory_space<vmem>>, vector<1x1x32xf32>
    %10 = vector.shape_cast %9 : vector<1x1x32xf32> to vector<1x32xf32>
    %11 = vector.broadcast %10 : vector<1x32xf32> to vector<16x32xf32>
    %12 = arith.mulf %6, %11 : vector<16x32xf32>
    %13 = arith.addf %8, %12 : vector<16x32xf32>
    %c0_12 = arith.constant 0 : index
    %c0_13 = arith.constant 0 : index
    %c0_14 = arith.constant 0 : index
    %14 = vector.load %arg8[%c0_12, %c0_13, %c0_14] : memref<1x16x32xf32, #tpu.memory_space<vmem>>, vector<1x16x32xf32>
    %15 = vector.shape_cast %14 : vector<1x16x32xf32> to vector<16x32xf32>
    %16 = vector.shape_cast %13 : vector<16x32xf32> to vector<1x16x32xf32>
    tpu.vector_store %arg8[%c0_12, %c0_13, %c0_14], %16 {strides = array<i32>} : memref<1x16x32xf32, #tpu.memory_space<vmem>>, vector<1x16x32xf32>,
    return
  }
  func.func @transform_0(%arg0: i32, %arg1: i32, %arg2: i32) -> (i32, i32, i32) {
    %c0_i32 = arith.constant 0 : i32
    %c0_i32_0 = arith.constant 0 : i32
    return %arg0, %arg1, %c0_i32 : i32, i32, i32
  }
  func.func @transform_1(%arg0: i32, %arg1: i32, %arg2: i32) -> (i32, i32) {
    %c0_i32 = arith.constant 0 : i32
    %c0_i32_0 = arith.constant 0 : i32
    return %c0_i32, %arg2 : i32, i32
  }
  func.func @transform_2(%arg0: i32, %arg1: i32, %arg2: i32) -> (i32, i32) {
    %c0_i32 = arith.constant 0 : i32
    %c0_i32_0 = arith.constant 0 : i32
    return %c0_i32, %arg2 : i32, i32
  }
  func.func @transform_3(%arg0: i32, %arg1: i32, %arg2: i32) -> (i32, i32, i32) {
    %c0_i32 = arith.constant 0 : i32
    return %arg0, %arg1, %arg2 : i32, i32, i32
  }
  func.func @transform_4(%arg0: i32, %arg1: i32, %arg2: i32) -> (i32, i32, i32) {
    %c0_i32 = arith.constant 0 : i32
    %c0_i32_0 = arith.constant 0 : i32
    return %arg0, %c0_i32, %arg2 : i32, i32, i32
  }
  func.func @transform_5(%arg0: i32, %arg1: i32, %arg2: i32) -> (i32, i32, i32) {
    %c0_i32 = arith.constant 0 : i32
    return %arg0, %arg1, %arg2 : i32, i32, i32
  }
}

module attributes {stable_mosaic.version = 11 : i64} {
  func.func @_lnmod_linear_kernel(%arg0: i32, %arg1: i32, %arg2: i32, %arg3: memref<1x16x32xf32, #tpu.memory_space<vmem>>, %arg4: memref<1x1x32xf32, #tpu.memory_space<vmem>>, %arg5: memref<1x1x32xf32, #tpu.memory_space<vmem>>, %arg6: memref<32x64xbf16, #tpu.memory_space<vmem>>, %arg7: memref<1x64xf32, #tpu.memory_space<vmem>>, %arg8: memref<1x16x64xbf16, #tpu.memory_space<vmem>>, %arg9: memref<16x32xbf16, #tpu.memory_space<vmem>>) attributes {dimension_semantics = [#tpu.dimension_semantics<parallel>, #tpu.dimension_semantics<parallel>, #tpu.dimension_semantics<arbitrary>], iteration_bounds = array<i64: 2, 1, 1>, scalar_prefetch = 0 : i64, scratch_operands = 1 : i64, tpu.core_type = #tpu.core_type<tc>, window_params = [{transform_indices = @transform_0, window_bounds = array<i64: 1, 16, 32>}, {transform_indices = @transform_1, window_bounds = array<i64: 1, 1, 32>}, {transform_indices = @transform_2, window_bounds = array<i64: 1, 1, 32>}, {transform_indices = @transform_3, window_bounds = array<i64: 32, 64>}, {transform_indices = @transform_4, window_bounds = array<i64: 1, 64>}, {transform_indices = @transform_5, window_bounds = array<i64: 1, 16, 64>}]} {
    %c0_i32 = arith.constant 0 : i32
    %0 = arith.cmpi eq, %arg2, %c0_i32 : i32
    %1 = arith.extui %0 : i1 to i32
    %c0_i32_0 = arith.constant 0 : i32
    %2 = arith.cmpi ne, %1, %c0_i32_0 : i32
    scf.if %2 {
      %c0_12 = arith.constant 0 : index
      %c0_13 = arith.constant 0 : index
      %c0_14 = arith.constant 0 : index
      %21 = vector.load %arg3[%c0_12, %c0_13, %c0_14] : memref<1x16x32xf32, #tpu.memory_space<vmem>>, vector<1x16x32xf32>
      %22 = vector.shape_cast %21 : vector<1x16x32xf32> to vector<16x32xf32>
      %cst_15 = arith.constant dense<0.000000e+00> : vector<16xf32>
      %23 = vector.multi_reduction <add>, %22, %cst_15 [1] : vector<16x32xf32> to vector<16xf32>
      %24 = vector.shape_cast %23 : vector<16xf32> to vector<16x1xf32>
      %cst_16 = arith.constant 3.200000e+01 : f32
      %25 = vector.broadcast %cst_16 : f32 to vector<16x1xf32>
      %26 = arith.divf %24, %25 : vector<16x1xf32>
      %27 = vector.broadcast %26 : vector<16x1xf32> to vector<16x32xf32>
      %28 = arith.subf %22, %27 : vector<16x32xf32>
      %29 = arith.mulf %28, %28 : vector<16x32xf32>
      %cst_17 = arith.constant dense<0.000000e+00> : vector<16xf32>
      %30 = vector.multi_reduction <add>, %29, %cst_17 [1] : vector<16x32xf32> to vector<16xf32>
      %31 = vector.shape_cast %30 : vector<16xf32> to vector<16x1xf32>
      %cst_18 = arith.constant 3.200000e+01 : f32
      %32 = vector.broadcast %cst_18 : f32 to vector<16x1xf32>
      %33 = arith.divf %31, %32 : vector<16x1xf32>
      %34 = vector.broadcast %26 : vector<16x1xf32> to vector<16x32xf32>
      %35 = arith.subf %22, %34 : vector<16x32xf32>
      %cst_19 = arith.constant 9.99999974E-6 : f32
      %36 = vector.broadcast %cst_19 : f32 to vector<16x1xf32>
      %37 = arith.addf %33, %36 : vector<16x1xf32>
      %38 = math.rsqrt %37 : vector<16x1xf32>
      %39 = vector.broadcast %38 : vector<16x1xf32> to vector<16x32xf32>
      %40 = arith.mulf %35, %39 : vector<16x32xf32>
      %c0_20 = arith.constant 0 : index
      %c0_21 = arith.constant 0 : index
      %c0_22 = arith.constant 0 : index
      %41 = vector.load %arg4[%c0_20, %c0_21, %c0_22] : memref<1x1x32xf32, #tpu.memory_space<vmem>>, vector<1x1x32xf32>
      %42 = vector.shape_cast %41 : vector<1x1x32xf32> to vector<1x32xf32>
      %43 = vector.broadcast %42 : vector<1x32xf32> to vector<16x32xf32>
      %44 = arith.mulf %40, %43 : vector<16x32xf32>
      %c0_23 = arith.constant 0 : index
      %c0_24 = arith.constant 0 : index
      %c0_25 = arith.constant 0 : index
      %45 = vector.load %arg5[%c0_23, %c0_24, %c0_25] : memref<1x1x32xf32, #tpu.memory_space<vmem>>, vector<1x1x32xf32>
      %46 = vector.shape_cast %45 : vector<1x1x32xf32> to vector<1x32xf32>
      %47 = vector.broadcast %46 : vector<1x32xf32> to vector<16x32xf32>
      %48 = arith.addf %44, %47 : vector<16x32xf32>
      %49 = arith.truncf %48 : vector<16x32xf32> to vector<16x32xbf16>
      %c0_26 = arith.constant 0 : index
      %c0_27 = arith.constant 0 : index
      %50 = vector.load %arg9[%c0_26, %c0_27] : memref<16x32xbf16, #tpu.memory_space<vmem>>, vector<16x32xbf16>
      tpu.vector_store %arg9[%c0_26, %c0_27], %49 {strides = array<i32>} : memref<16x32xbf16, #tpu.memory_space<vmem>>, vector<16x32xbf16>,
    } else {
    }
    %c0 = arith.constant 0 : index
    %c0_1 = arith.constant 0 : index
    %3 = vector.load %arg9[%c0, %c0_1] : memref<16x32xbf16, #tpu.memory_space<vmem>>, vector<16x32xbf16>
    %c0_2 = arith.constant 0 : index
    %c0_3 = arith.constant 0 : index
    %4 = vector.load %arg6[%c0_2, %c0_3] : memref<32x64xbf16, #tpu.memory_space<vmem>>, vector<32x64xbf16>
    %cst = arith.constant dense<0.000000e+00> : vector<16x64xf32>
    %5 = tpu.matmul %3, %4, %cst {dimension_numbers = #tpu.dot_dimension_numbers<[1], [0], [0], [1], [0, 0, 1, 1], [], []>} : vector<16x32xbf16>, vector<32x64xbf16>, vector<16x64xf32> -> vector<16x64xf32>
    %c0_4 = arith.constant 0 : index
    %c0_5 = arith.constant 0 : index
    %6 = vector.load %arg7[%c0_4, %c0_5] : memref<1x64xf32, #tpu.memory_space<vmem>>, vector<1x64xf32>
    %7 = vector.broadcast %6 : vector<1x64xf32> to vector<16x64xf32>
    %8 = arith.addf %5, %7 : vector<16x64xf32>
    %cst_6 = arith.constant 5.000000e-01 : f32
    %9 = vector.broadcast %cst_6 : f32 to vector<16x64xf32>
    %10 = arith.mulf %9, %8 : vector<16x64xf32>
    %cst_7 = arith.constant 0.707106769 : f32
    %11 = vector.broadcast %cst_7 : f32 to vector<16x64xf32>
    %12 = arith.mulf %8, %11 : vector<16x64xf32>
    %13 = math.erf %12 : vector<16x64xf32>
    %cst_8 = arith.constant 1.000000e+00 : f32
    %14 = vector.broadcast %cst_8 : f32 to vector<16x64xf32>
    %15 = arith.addf %14, %13 : vector<16x64xf32>
    %16 = arith.mulf %10, %15 : vector<16x64xf32>
    %17 = arith.truncf %16 : vector<16x64xf32> to vector<16x64xbf16>
    %c0_9 = arith.constant 0 : index
    %c0_10 = arith.constant 0 : index
    %c0_11 = arith.constant 0 : index
    %18 = vector.load %arg8[%c0_9, %c0_10, %c0_11] : memref<1x16x64xbf16, #tpu.memory_space<vmem>>, vector<1x16x64xbf16>
    %19 = vector.shape_cast %18 : vector<1x16x64xbf16> to vector<16x64xbf16>
    %20 = vector.shape_cast %17 : vector<16x64xbf16> to vector<1x16x64xbf16>
    tpu.vector_store %arg8[%c0_9, %c0_10, %c0_11], %20 {strides = array<i32>} : memref<1x16x64xbf16, #tpu.memory_space<vmem>>, vector<1x16x64xbf16>,
    return
  }
  func.func @transform_0(%arg0: i32, %arg1: i32, %arg2: i32) -> (i32, i32, i32) {
    %c0_i32 = arith.constant 0 : i32
    %c0_i32_0 = arith.constant 0 : i32
    return %arg0, %arg1, %c0_i32 : i32, i32, i32
  }
  func.func @transform_1(%arg0: i32, %arg1: i32, %arg2: i32) -> (i32, i32, i32) {
    %c0_i32 = arith.constant 0 : i32
    %c0_i32_0 = arith.constant 0 : i32
    %c0_i32_1 = arith.constant 0 : i32
    return %arg0, %c0_i32, %c0_i32_0 : i32, i32, i32
  }
  func.func @transform_2(%arg0: i32, %arg1: i32, %arg2: i32) -> (i32, i32, i32) {
    %c0_i32 = arith.constant 0 : i32
    %c0_i32_0 = arith.constant 0 : i32
    %c0_i32_1 = arith.constant 0 : i32
    return %arg0, %c0_i32, %c0_i32_0 : i32, i32, i32
  }
  func.func @transform_3(%arg0: i32, %arg1: i32, %arg2: i32) -> (i32, i32) {
    %c0_i32 = arith.constant 0 : i32
    %c0_i32_0 = arith.constant 0 : i32
    return %c0_i32, %arg2 : i32, i32
  }
  func.func @transform_4(%arg0: i32, %arg1: i32, %arg2: i32) -> (i32, i32) {
    %c0_i32 = arith.constant 0 : i32
    %c0_i32_0 = arith.constant 0 : i32
    return %c0_i32, %arg2 : i32, i32
  }
  func.func @transform_5(%arg0: i32, %arg1: i32, %arg2: i32) -> (i32, i32, i32) {
    %c0_i32 = arith.constant 0 : i32
    return %arg0, %arg1, %arg2 : i32, i32, i32
  }
}

module attributes {stable_mosaic.version = 11 : i64} {
  func.func @_matmul_kernel(%arg0: i32, %arg1: i32, %arg2: i32, %arg3: memref<32x32xf32, #tpu.memory_space<vmem>>, %arg4: memref<32x8xbf16, #tpu.memory_space<vmem>>, %arg5: memref<1x8xf32, #tpu.memory_space<vmem>>, %arg6: memref<32x8xf32, #tpu.memory_space<vmem>>, %arg7: memref<32x8xf32, #tpu.memory_space<vmem>>) attributes {dimension_semantics = [#tpu.dimension_semantics<parallel>, #tpu.dimension_semantics<parallel>, #tpu.dimension_semantics<arbitrary>], iteration_bounds = array<i64: 1, 1, 1>, scalar_prefetch = 0 : i64, scratch_operands = 1 : i64, tpu.core_type = #tpu.core_type<tc>, window_params = [{transform_indices = @transform_0, window_bounds = array<i64: 32, 32>}, {transform_indices = @transform_1, window_bounds = array<i64: 32, 8>}, {transform_indices = @transform_2, window_bounds = array<i64: 1, 8>}, {transform_indices = @transform_3, window_bounds = array<i64: 32, 8>}]} {
    %c0_i32 = arith.constant 0 : i32
    %0 = arith.cmpi eq, %arg2, %c0_i32 : i32
    %1 = arith.extui %0 : i1 to i32
    %c0_i32_0 = arith.constant 0 : i32
    %2 = arith.cmpi ne, %1, %c0_i32_0 : i32
    scf.if %2 {
      %cst_10 = arith.constant 0.000000e+00 : f32
      %13 = vector.broadcast %cst_10 : f32 to vector<32x8xf32>
      %c0_11 = arith.constant 0 : index
      %c0_12 = arith.constant 0 : index
      %14 = vector.load %arg7[%c0_11, %c0_12] : memref<32x8xf32, #tpu.memory_space<vmem>>, vector<32x8xf32>
      tpu.vector_store %arg7[%c0_11, %c0_12], %13 {strides = array<i32>} : memref<32x8xf32, #tpu.memory_space<vmem>>, vector<32x8xf32>,
    } else {
    }
    %c0 = arith.constant 0 : index
    %c0_1 = arith.constant 0 : index
    %3 = vector.load %arg7[%c0, %c0_1] : memref<32x8xf32, #tpu.memory_space<vmem>>, vector<32x8xf32>
    %c0_2 = arith.constant 0 : index
    %c0_3 = arith.constant 0 : index
    %4 = vector.load %arg3[%c0_2, %c0_3] : memref<32x32xf32, #tpu.memory_space<vmem>>, vector<32x32xf32>
    %5 = arith.truncf %4 : vector<32x32xf32> to vector<32x32xbf16>
    %c0_4 = arith.constant 0 : index
    %c0_5 = arith.constant 0 : index
    %6 = vector.load %arg4[%c0_4, %c0_5] : memref<32x8xbf16, #tpu.memory_space<vmem>>, vector<32x8xbf16>
    %cst = arith.constant dense<0.000000e+00> : vector<32x8xf32>
    %7 = tpu.matmul %5, %6, %cst {dimension_numbers = #tpu.dot_dimension_numbers<[1], [0], [0], [1], [0, 0, 1, 1], [], []>} : vector<32x32xbf16>, vector<32x8xbf16>, vector<32x8xf32> -> vector<32x8xf32>
    %8 = arith.addf %3, %7 : vector<32x8xf32>
    %c0_6 = arith.constant 0 : index
    %c0_7 = arith.constant 0 : index
    %9 = vector.load %arg7[%c0_6, %c0_7] : memref<32x8xf32, #tpu.memory_space<vmem>>, vector<32x8xf32>
    tpu.vector_store %arg7[%c0_6, %c0_7], %8 {strides = array<i32>} : memref<32x8xf32, #tpu.memory_space<vmem>>, vector<32x8xf32>,
    %c0_i32_8 = arith.constant 0 : i32
    %10 = arith.cmpi eq, %arg2, %c0_i32_8 : i32
    %11 = arith.extui %10 : i1 to i32
    %c0_i32_9 = arith.constant 0 : i32
    %12 = arith.cmpi ne, %11, %c0_i32_9 : i32
    scf.if %12 {
      %c0_10 = arith.constant 0 : index
      %c0_11 = arith.constant 0 : index
      %13 = vector.load %arg7[%c0_10, %c0_11] : memref<32x8xf32, #tpu.memory_space<vmem>>, vector<32x8xf32>
      %c0_12 = arith.constant 0 : index
      %c0_13 = arith.constant 0 : index
      %14 = vector.load %arg5[%c0_12, %c0_13] : memref<1x8xf32, #tpu.memory_space<vmem>>, vector<1x8xf32>
      %15 = vector.broadcast %14 : vector<1x8xf32> to vector<32x8xf32>
      %16 = arith.addf %13, %15 : vector<32x8xf32>
      %c0_14 = arith.constant 0 : index
      %c0_15 = arith.constant 0 : index
      %17 = vector.load %arg6[%c0_14, %c0_15] : memref<32x8xf32, #tpu.memory_space<vmem>>, vector<32x8xf32>
      tpu.vector_store %arg6[%c0_14, %c0_15], %16 {strides = array<i32>} : memref<32x8xf32, #tpu.memory_space<vmem>>, vector<32x8xf32>,
    } else {
    }
    return
  }
  func.func @transform_0(%arg0: i32, %arg1: i32, %arg2: i32) -> (i32, i32) {
    %c0_i32 = arith.constant 0 : i32
    return %arg0, %arg2 : i32, i32
  }
  func.func @transform_1(%arg0: i32, %arg1: i32, %arg2: i32) -> (i32, i32) {
    %c0_i32 = arith.constant 0 : i32
    return %arg2, %arg1 : i32, i32
  }
  func.func @transform_2(%arg0: i32, %arg1: i32, %arg2: i32) -> (i32, i32) {
    %c0_i32 = arith.constant 0 : i32
    %c0_i32_0 = arith.constant 0 : i32
    return %c0_i32, %arg1 : i32, i32
  }
  func.func @transform_3(%arg0: i32, %arg1: i32, %arg2: i32) -> (i32, i32) {
    %c0_i32 = arith.constant 0 : i32
    return %arg0, %arg1 : i32, i32
  }
}

module attributes {stable_mosaic.version = 11 : i64} {
  func.func @_linear_residual_kernel(%arg0: i32, %arg1: i32, %arg2: i32, %arg3: memref<1x16x64xbf16, #tpu.memory_space<vmem>>, %arg4: memref<64x32xbf16, #tpu.memory_space<vmem>>, %arg5: memref<1x32xf32, #tpu.memory_space<vmem>>, %arg6: memref<1x16x32xf32, #tpu.memory_space<vmem>>, %arg7: memref<1x1x32xf32, #tpu.memory_space<vmem>>, %arg8: memref<1x16x32xf32, #tpu.memory_space<vmem>>) attributes {dimension_semantics = [#tpu.dimension_semantics<parallel>, #tpu.dimension_semantics<parallel>, #tpu.dimension_semantics<parallel>], iteration_bounds = array<i64: 2, 1, 1>, scalar_prefetch = 0 : i64, scratch_operands = 0 : i64, tpu.core_type = #tpu.core_type<tc>, window_params = [{transform_indices = @transform_0, window_bounds = array<i64: 1, 16, 64>}, {transform_indices = @transform_1, window_bounds = array<i64: 64, 32>}, {transform_indices = @transform_2, window_bounds = array<i64: 1, 32>}, {transform_indices = @transform_3, window_bounds = array<i64: 1, 16, 32>}, {transform_indices = @transform_4, window_bounds = array<i64: 1, 1, 32>}, {transform_indices = @transform_5, window_bounds = array<i64: 1, 16, 32>}]} {
    %c0 = arith.constant 0 : index
    %c0_0 = arith.constant 0 : index
    %c0_1 = arith.constant 0 : index
    %0 = vector.load %arg3[%c0, %c0_0, %c0_1] : memref<1x16x64xbf16, #tpu.memory_space<vmem>>, vector<1x16x64xbf16>
    %1 = vector.shape_cast %0 : vector<1x16x64xbf16> to vector<16x64xbf16>
    %c0_2 = arith.constant 0 : index
    %c0_3 = arith.constant 0 : index
    %2 = vector.load %arg4[%c0_2, %c0_3] : memref<64x32xbf16, #tpu.memory_space<vmem>>, vector<64x32xbf16>
    %cst = arith.constant dense<0.000000e+00> : vector<16x32xf32>
    %3 = tpu.matmul %1, %2, %cst {dimension_numbers = #tpu.dot_dimension_numbers<[1], [0], [0], [1], [0, 0, 1, 1], [], []>} : vector<16x64xbf16>, vector<64x32xbf16>, vector<16x32xf32> -> vector<16x32xf32>
    %c0_4 = arith.constant 0 : index
    %c0_5 = arith.constant 0 : index
    %4 = vector.load %arg5[%c0_4, %c0_5] : memref<1x32xf32, #tpu.memory_space<vmem>>, vector<1x32xf32>
    %5 = vector.broadcast %4 : vector<1x32xf32> to vector<16x32xf32>
    %6 = arith.addf %3, %5 : vector<16x32xf32>
    %c0_6 = arith.constant 0 : index
    %c0_7 = arith.constant 0 : index
    %c0_8 = arith.constant 0 : index
    %7 = vector.load %arg6[%c0_6, %c0_7, %c0_8] : memref<1x16x32xf32, #tpu.memory_space<vmem>>, vector<1x16x32xf32>
    %8 = vector.shape_cast %7 : vector<1x16x32xf32> to vector<16x32xf32>
    %c0_9 = arith.constant 0 : index
    %c0_10 = arith.constant 0 : index
    %c0_11 = arith.constant 0 : index
    %9 = vector.load %arg7[%c0_9, %c0_10, %c0_11] : memref<1x1x32xf32, #tpu.memory_space<vmem>>, vector<1x1x32xf32>
    %10 = vector.shape_cast %9 : vector<1x1x32xf32> to vector<1x32xf32>
    %11 = vector.broadcast %10 : vector<1x32xf32> to vector<16x32xf32>
    %12 = arith.mulf %6, %11 : vector<16x32xf32>
    %13 = arith.addf %8, %12 : vector<16x32xf32>
    %c0_12 = arith.constant 0 : index
    %c0_13 = arith.constant 0 : index
    %c0_14 = arith.constant 0 : index
    %14 = vector.load %arg8[%c0_12, %c0_13, %c0_14] : memref<1x16x32xf32, #tpu.memory_space<vmem>>, vector<1x16x32xf32>
    %15 = vector.shape_cast %14 : vector<1x16x32xf32> to vector<16x32xf32>
    %16 = vector.shape_cast %13 : vector<16x32xf32> to vector<1x16x32xf32>
    tpu.vector_store %arg8[%c0_12, %c0_13, %c0_14], %16 {strides = array<i32>} : memref<1x16x32xf32, #tpu.memory_space<vmem>>, vector<1x16x32xf32>,
    return
  }
  func.func @transform_0(%arg0: i32, %arg1: i32, %arg2: i32) -> (i32, i32, i32) {
    %c0_i32 = arith.constant 0 : i32
    %c0_i32_0 = arith.constant 0 : i32
    return %arg0, %arg1, %c0_i32 : i32, i32, i32
  }
  func.func @transform_1(%arg0: i32, %arg1: i32, %arg2: i32) -> (i32, i32) {
    %c0_i32 = arith.constant 0 : i32
    %c0_i32_0 = arith.constant 0 : i32
    return %c0_i32, %arg2 : i32, i32
  }
  func.func @transform_2(%arg0: i32, %arg1: i32, %arg2: i32) -> (i32, i32) {
    %c0_i32 = arith.constant 0 : i32
    %c0_i32_0 = arith.constant 0 : i32
    return %c0_i32, %arg2 : i32, i32
  }
  func.func @transform_3(%arg0: i32, %arg1: i32, %arg2: i32) -> (i32, i32, i32) {
    %c0_i32 = arith.constant 0 : i32
    return %arg0, %arg1, %arg2 : i32, i32, i32
  }
  func.func @transform_4(%arg0: i32, %arg1: i32, %arg2: i32) -> (i32, i32, i32) {
    %c0_i32 = arith.constant 0 : i32
    %c0_i32_0 = arith.constant 0 : i32
    return %arg0, %c0_i32, %arg2 : i32, i32, i32
  }
  func.func @transform_5(%arg0: i32, %arg1: i32, %arg2: i32) -> (i32, i32, i32) {
    %c0_i32 = arith.constant 0 : i32
    return %arg0, %arg1, %arg2 : i32, i32, i32
  }
}

</mosaic_0001>

<bundles_post_ra>
// kernel: transformer_forward.13
= control target key start
LH: loop header
LB: loop body
LE: loop exit
PB: predicated region body
PF: predicated region fallthrough
CT: control target
= control target key end

     0   :  { %vm42_vm0 = vcmask 1043456   ;;  %vm19_vm1 = vcmask 261120   ;;  %v102_v3 = vmov 0.0   ;;  %vm35_vm2 = vcmask 64512   ;;  %s165_s1 = inlined_call_operand.vmem [shape: bf16[8,32], index: 1, kind: input, shape index: {}]   ;;  %s166_s0 = inlined_call_operand.vmem [shape: f32[32,8], index: 0, kind: input, shape index: {}]   ;;  %s167_s2 = inlined_call_operand.vmem [shape: f32[1,32], index: 2, kind: input, shape index: {}]   ;;  %s168_s3 = inlined_call_operand.vmem [shape: f32[32,32], index: 3, kind: output, shape index: {}]  }
   0x1   :  { %v34_v0 = vld [vmem:[%s165_s1] sm:$0xf]  ;;  %v29_v2 = vld [vmem:[%s166_s0 + $0x8] sm:$0xff]  ;;  %20 = vst.msk [vmem:[#allocation2] sm:$0xff] %vm19_vm1, %v102_v3  ;;  %v30_v6 = vld [vmem:[%s166_s0 + $0x10] sm:$0xff] }
   0x2   :  { %v28_v1 = vld [vmem:[%s166_s0] sm:$0xff]  ;;  %v44_v4 = vsel %vm42_vm0, %v34_v0, 0  ;;  %v31_v7 = vld [vmem:[%s166_s0 + $0x18] sm:$0xff]  ;;  %21 = vst.msk [vmem:[#allocation2 + $0x8] sm:$0xff] %vm19_vm1, %v102_v3 }
   0x3   :  { %v32_v5 = vpack.c.bf16 %v29_v2, %v28_v1  ;;  %53 = vmatpush.bf16.msra.mxu0 %v44_v4  ;;  %99 = vmatpush.bf16.msra.mxu1 %v44_v4  ;;  %v33_v8 = vpack.c.bf16 %v31_v7, %v30_v6  ;;  %22 = vst.msk [vmem:[#allocation2 + $0x10] sm:$0xff] %vm19_vm1, %v102_v3  ;;  %v101_v17 = vld [vmem:[%s167_s2] ss:$0 sm:$0xff] }
   0x4   :  { %23 = vst.msk [vmem:[#allocation2 + $0x18] sm:$0xff] %vm19_vm1, %v102_v3 }
   0x6   :  { %97 = vmatmul.msk.bf16.vlgmr.msra.gmra.mxu0 %vm35_vm2, %v32_v5  ;;  %98 = vmatmul.msk.bf16.vlgmr.msra.gmra.mxu1 %vm35_vm2, %v33_v8 }
   0x8   :  { %v24_v9 = vld [vmem:[#allocation2] sm:$0xff] }
   0x9   :  { %v25_v15 = vld [vmem:[#allocation2 + $0x8] sm:$0xff] }
   0xa   :  { %v26_v10 = vld [vmem:[#allocation2 + $0x10] sm:$0xff] }
   0xb   :  { %v27_v16 = vld [vmem:[#allocation2 + $0x18] sm:$0xff] }
  0x83   :  { %v55_v11 = vpop.f32.mrf.mxu0  ;;  %v60_v12 = vpop.f32.mrf.mxu1 }
  0x84   :  { %v65_v13 = vadd.f32 %v55_v11, %v24_v9  ;;  %v67_v14 = vadd.f32 %v60_v12, %v26_v10 }
  0x86   :  { %70 = vst.msk [vmem:[#allocation2] sm:$0xff] %vm19_vm1, %v65_v13 }
  0x87   :  { %72 = vst.msk [vmem:[#allocation2 + $0x10] sm:$0xff] %vm19_vm1, %v67_v14 }
  0x8b   :  { %v57_v18 = vpop.f32.mrf.mxu0  ;;  %v62_v19 = vpop.f32.mrf.mxu1 }
  0x8c   :  { %v66_v20 = vadd.f32 %v57_v18, %v25_v15  ;;  %v68_v21 = vadd.f32 %v62_v19, %v27_v16 }
  0x8d   :  { %v77_v22 = vld [vmem:[#allocation2] sm:$0xff] }
  0x8e   :  { %v85_v23 = vadd.f32 %v101_v17, %v77_v22  ;;  %v79_v24 = vld [vmem:[#allocation2 + $0x10] sm:$0xff]  ;;  %71 = vst.msk [vmem:[#allocation2 + $0x8] sm:$0xff] %vm19_vm1, %v66_v20 }
  0x8f   :  { %v87_v25 = vadd.f32 %v101_v17, %v79_v24  ;;  %73 = vst.msk [vmem:[#allocation2 + $0x18] sm:$0xff] %vm19_vm1, %v68_v21 }
  0x90   :  { %89 = vst.msk [vmem:[%s168_s3] sm:$0xff] %vm19_vm1, %v85_v23 }
  0x91   :  { %91 = vst.msk [vmem:[%s168_s3 + $0x10] sm:$0xff] %vm19_vm1, %v87_v25 }
  0x95   :  { %v78_v26 = vld [vmem:[#allocation2 + $0x8] sm:$0xff] }
  0x96   :  { %v86_v27 = vadd.f32 %v101_v17, %v78_v26  ;;  %v80_v28 = vld [vmem:[#allocation2 + $0x18] sm:$0xff] }
  0x97   :  { %v88_v29 = vadd.f32 %v101_v17, %v80_v28 }
  0x98   :  { %90 = vst.msk [vmem:[%s168_s3 + $0x8] sm:$0xff] %vm19_vm1, %v86_v27 }
  0x99   :  { %92 = vst.msk [vmem:[%s168_s3 + $0x18] sm:$0xff] %vm19_vm1, %v88_v29 }

// kernel: transformer_forward.15
= control target key start
LH: loop header
LB: loop body
LE: loop exit
PB: predicated region body
PF: predicated region fallthrough
CT: control target
= control target key end

     0   :  { %s729_s18 = smov 0   ;;  %s731_s19 = smov 0   ;;  %s798_s0 = inlined_call_operand.vmem [shape: f32[2,16,32], index: 0, kind: input, shape index: {}]   ;;  %s799_s1 = inlined_call_operand.vmem [shape: f32[2,1,32], index: 1, kind: input, shape index: {}]   ;;  %s800_s2 = inlined_call_operand.vmem [shape: f32[2,1,32], index: 2, kind: input, shape index: {}]   ;;  %s801_s3 = inlined_call_operand.vmem [shape: bf16[32,96], index: 3, kind: input, shape index: {}]   ;;  %s802_s4 = inlined_call_operand.vmem [shape: f32[1,96], index: 4, kind: input, shape index: {}]   ;;  %s803_s5 = inlined_call_operand.vmem [shape: bf16[2,16,96], index: 5, kind: output, shape index: {}]  }
   0x1   :  { %s733_s20 = smov 0  }
   0x2 LB: > { %s34_s21 = sadd.s32 1, %s692_s19  ;;  %p615_p0 = scmp.ge.s32.totalorder %s696_s20, 1  ;;  %s696_s20 = sphi %s733_s20, %s15_s20   ;;  %s692_s19 = sphi %s731_s19, %s805_s19   ;;  %s688_s18 = sphi %s729_s18, %s804_s18  }
   0x3   : > { %p36_p1 = scmp.ge.s32.totalorder %s34_s21, 2  ;;  %p250_p2 = scmp.lt.s32.totalorder %s696_s20, 3 }
   0x5   : > { %s807_s21 = smov (%p36_p1, %s34_s21), 0  ;;  %p251_p3 = pnand %p615_p0, %p250_p2 }
   0x6   : > { %p303_p4 = scmp.lt.s32.totalorder (!%p251_p3), %s688_s18, 1 }
   0x7   : > { %254 = sbr.rel (%p251_p3) target bundleno = 441 (0x1b9), region = 40 }
   0xc   : > { %s809_s18 = smov (!%p303_p4, %s688_s18), 1  ;;  %vm345_vm0 = vcmask 261120   ;;  %v698_v4 = vmov 32.0   ;;  %v639_v24 = vld [vmem:[%s801_s3 + $0x8] sm:$0xff]  ;;  %v638_v27 = vld [vmem:[%s801_s3] sm:$0xff]  ;;  %vm411_vm6 = vcmask 257024  }
   0xd   : > { %s635_s22 = sshll.u32 %s809_s18, 4  ;;  %s314_s28 = scalar_lea.vmem %s799_s1, %s809_s18  ;;  %668 = vrcp.f32 %v698_v4  ;;  %451 = vmatpush.bf16.msra.mxu0 %v639_v24  ;;  %v667_v54 = vld [vmem:[%s802_s4] ss:$0 sm:$0xff]  ;;  %vm461_vm9 = vcmask 781312  }
   0xe   : > { %s310_s25 = scalar_lea.vmem %s798_s0, %s635_s22  ;;  %s317_s6 = scalar_lea.vmem %s800_s2, %s809_s18  ;;  %v665_v37 = vld [vmem:[%s314_s28] ss:$0 sm:$0xff] }
   0xf   : > { %v343_v0 = vld [vmem:[%s310_s25] sm:$0xff]  ;;  %v344_v2 = vld [vmem:[%s310_s25 + $0x8] sm:$0xff]  ;;  %s636_s17 = sshll.u32 %s809_s18, 3 }
  0x10   : > { %v346_v1 = vsel %vm345_vm0, %v343_v0, 0.0  ;;  %v349_v3 = vsel %vm345_vm0, %v344_v2, 0.0  ;;  %v666_v40 = vld [vmem:[%s317_s6] ss:$0 sm:$0xff]  ;;  %s336_s24 = scalar_lea.vmem %s803_s5, %s636_s17 }
  0x11   : > { %347 = vadd.xlane.f32.xlu0 %v346_v1  ;;  %452 = vmatpush.bf16.msra.mxu0 %v638_v27 }
  0x13   : > { %v669_v5 = vpop.eup %668 }
  0x14   : > { %v353_v6 = vmul.f32 32.0, %v669_v5  ;;  %vm357_vm1 = vweird.f32 %v669_v5 }
  0x16   : > { %v354_v7 = vsub.f32 1.0, %v353_v6 }
  0x18   : > { %v355_v8 = vmul.f32 %v669_v5, %v354_v7 }
  0x19   : > { %350 = vadd.xlane.f32.xlu0 %v349_v3 }
  0x1a   : > { %v356_v9 = vadd.f32 %v669_v5, %v355_v8 }
  0x1c   : > { %v358_v10 = vsel %vm357_vm1, %v669_v5, %v356_v9 }
  0x84   : > { %v348_v11 = vpop.xlane.xlu0 %347 }
  0x85   : > { %v359_v12 = vmul.f32 %v358_v10, %v348_v11 }
  0x87   : > { %v361_v13 = vsub.f32 %v343_v0, %v359_v12 }
  0x89   : > { %v363_v14 = vmul.f32 %v361_v13, %v361_v13 }
  0x8b   : > { %v365_v15 = vsel %vm345_vm0, %v363_v14, 0.0 }
  0x8c   : > { %366 = vadd.xlane.f32.xlu1 %v365_v15  ;;  %v351_v16 = vpop.xlane.xlu0 %350 }
  0x8d   : > { %v360_v17 = vmul.f32 %v358_v10, %v351_v16 }
  0x8f   : > { %v362_v18 = vsub.f32 %v344_v2, %v360_v17 }
  0x91   : > { %v364_v19 = vmul.f32 %v362_v18, %v362_v18 }
  0x93   : > { %v368_v20 = vsel %vm345_vm0, %v364_v19, 0.0 }
  0x94   : > { %369 = vadd.xlane.f32.xlu1 %v368_v20 }
  0xff   : > { %v367_v21 = vpop.xlane.xlu1 %366 }
 0x100   : > { %v371_v22 = vmul.f32 %v367_v21, %v358_v10 }
 0x102   : > { %v373_v23 = vadd.f32 1e-05, %v371_v22 }
 0x104   : > { %670 = vrsqrt.f32 %v373_v23  ;;  %vm381_vm3 = vweird.f32 %v373_v23 }
 0x107   : > { %v370_v25 = vpop.xlane.xlu1 %369 }
 0x108   : > { %v372_v26 = vmul.f32 %v370_v25, %v358_v10 }
 0x10a   : > { %v671_v28 = vpop.eup %670  ;;  %v374_v29 = vadd.f32 1e-05, %v372_v26 }
 0x10b   : > { %v376_v30 = vmul.f32 %v671_v28, %v373_v23  ;;  %vm382_vm2 = vweird.f32 %v671_v28 }
 0x10c   : > { %672 = vrsqrt.f32 %v374_v29  ;;  %vm383_vm4 = vmor %vm381_vm3, %vm382_vm2  ;;  %vm391_vm7 = vweird.f32 %v374_v29 }
 0x10d   : > { %v377_v31 = vmul.f32 %v671_v28, %v376_v30 }
 0x10f   : > { %v378_v32 = vmul.f32 0.5, %v377_v31 }
 0x111   : > { %v379_v33 = vsub.f32 1.5, %v378_v32 }
 0x112   : > { %v673_v34 = vpop.eup %672 }
 0x113   : > { %v380_v35 = vmul.f32 %v671_v28, %v379_v33  ;;  %v386_v36 = vmul.f32 %v673_v34, %v374_v29  ;;  %vm392_vm5 = vweird.f32 %v673_v34 }
 0x114   : > { %vm393_vm8 = vmor %vm391_vm7, %vm392_vm5 }
 0x115   : > { %v384_v38 = vsel %vm383_vm4, %v671_v28, %v380_v35  ;;  %v387_v39 = vmul.f32 %v673_v34, %v386_v36 }
 0x116   : > { %v395_v41 = vmul.f32 %v384_v38, %v361_v13 }
 0x117   : > { %v388_v42 = vmul.f32 0.5, %v387_v39 }
 0x118   : > { %v401_v43 = vmul.f32 %v665_v37, %v395_v41 }
 0x119   : > { %v389_v44 = vsub.f32 1.5, %v388_v42 }
 0x11a   : > { %v407_v45 = vadd.f32 %v666_v40, %v401_v43 }
 0x11b   : > { %v390_v46 = vmul.f32 %v673_v34, %v389_v44 }
 0x11c   : > { %v409_v47 = vpack.c.bf16 %v407_v45, %v407_v45 }
 0x11d   : > { %v394_v48 = vsel %vm393_vm8, %v673_v34, %v390_v46 }
 0x11e   : > { %412 = vst.msk [vmem:[#allocation2] sm:$0xf] %vm411_vm6, %v409_v47  ;;  %v396_v49 = vmul.f32 %v394_v48, %v362_v18 }
 0x120   : > { %v402_v50 = vmul.f32 %v665_v37, %v396_v49 }
 0x122   : > { %v408_v51 = vadd.f32 %v666_v40, %v402_v50 }
 0x124   : > { %v410_v52 = vpack.c.bf16 %v408_v51, %v408_v51 }
 0x126   : > { %413 = vst.msk [vmem:[#allocation2 + $0x4] sm:$0xf] %vm411_vm6, %v410_v52 }
 0x12d   : > { %v637_v53 = vld [vmem:[#allocation2] sm:$0xff] }
 0x12e   : > { %632 = vmatmul.msk.bf16.vlgmr.msra.gmra.mxu0 %vm345_vm0, %v637_v53 }
 0x1ab   : > { %v454_v55 = vpop.f32.mrf.mxu0 }
 0x1ac   : > { %v455_v56 = vadd.f32 %v667_v54, %v454_v55 }
 0x1ae   : > { %v459_v57 = vpack.c.bf16 %v455_v56, %v455_v56 }
 0x1b0   : > { %462 = vst.msk [vmem:[%s336_s24] sm:$0xf] %vm461_vm9, %v459_v57 }
 0x1b3   : > { %v456_v58 = vpop.f32.mrf.mxu0 }
 0x1b4   : > { %v457_v59 = vadd.f32 %v667_v54, %v456_v58 }
 0x1b6   : > { %v460_v60 = vpack.c.bf16 %v457_v59, %v457_v59 }
 0x1b8   : > { %463 = vst.msk [vmem:[%s336_s24 + $0x4] sm:$0xf] %vm461_vm9, %v460_v60 }
 0x1b9 PF: > { %s15_s20 = sadd.s32 1, %s696_s20   ;;  %s804_s18 = smov %s692_s19 }
 0x1ba   : > { %p12_p5 = scmp.ge.s32.totalorder %s15_s20, 4   ;;  %s805_s19 = smov %s807_s21 }
 0x1bc   :  { %14 = sbr.rel (!%p12_p5) target bundleno = 2 (0x2), region = 86 }

// kernel: transformer_forward.14
= control target key start
LH: loop header
LB: loop body
LE: loop exit
PB: predicated region body
PF: predicated region fallthrough
CT: control target
= control target key end

     0   :  { %vm43_vm0 = vcmask 130048   ;;  %v137_v11 = vmov 0.0   ;;  %vm91_vm1 = vcmask 1041408   ;;  %vm93_vm2 = vcmask 1043456   ;;  %s187_s1 = inlined_call_operand.vmem [shape: bf16[16,384], index: 1, kind: input, shape index: {}]   ;;  %s188_s0 = inlined_call_operand.vmem [shape: f32[2,16], index: 0, kind: input, shape index: {}]   ;;  %s189_s2 = inlined_call_operand.vmem [shape: f32[1,384], index: 2, kind: input, shape index: {}]   ;;  %s190_s3 = inlined_call_operand.vmem [shape: f32[2,384], index: 3, kind: output, shape index: {}]  }
   0x1   :  { %v120_v0 = vld [vmem:[%s187_s1] sm:$0xf]  ;;  %v134_v1 = vld [vmem:[%s187_s1 + $0x8] sm:$0xf0]  ;;  %v133_v2 = vld [vmem:[%s187_s1 + $0x4] sm:$0xf] }
   0x2   :  { %v121_v3 = vor.u32 %v134_v1, %v120_v0  ;;  %v122_v4 = vld [vmem:[%s187_s1 + $0xc] sm:$0xf0]  ;;  %v128_v5 = vld [vmem:[%s187_s1 + $0x8] sm:$0xf]  ;;  %v135_v6 = vld [vmem:[%s187_s1 + $0x10] sm:$0xf0] }
   0x3   :  { %v125_v7 = vor.u32 %v133_v2, %v122_v4  ;;  %v129_v8 = vor.u32 %v135_v6, %v128_v5  ;;  %v21_v9 = vld [vmem:[%s188_s0] sm:$0x3]  ;;  %19 = vst [vmem:[#allocation2] sm:$0x3f] %v137_v11 }
   0x4   :  { %54 = vmatpush.bf16.msra.mxu0 %v121_v3  ;;  %v22_v10 = vpack.c.bf16 %v21_v9, %v21_v9  ;;  %v102_v15 = vld [vmem:[%s189_s2] sm:$0x7] }
   0x5   :  { %67 = vmatpush.bf16.msra.mxu1 %v125_v7  ;;  %80 = vmatpush.bf16.msra.mxu2 %v129_v8  ;;  %v105_v17 = vperm.slane %v102_v15, 1  ;;  %v106_v24 = vperm.slane %v102_v15, 2  ;;  %v104_v25 = vperm.slane %v102_v15, 0 }
   0x7   :  { %130 = vmatmul.msk.bf16.vlgmr.msra.gmra.mxu0 %vm43_vm0, %v22_v10  ;;  %v107_v26 = vrot.slane %v105_v17, 6  ;;  %v108_v28 = vrot.slane %v106_v24, 4 }
   0x8   :  { %131 = vmatmul.msk.bf16.vlgmr.msra.gmra.mxu1 %vm43_vm0, %v22_v10  ;;  %132 = vmatmul.msk.bf16.vlgmr.msra.gmra.mxu2 %vm43_vm0, %v22_v10 }
   0x9   :  { %v109_v29 = vsel %vm91_vm1, %v104_v25, %v107_v26 }
   0xa   :  { %v20_v19 = vld [vmem:[#allocation2] sm:$0x3f]  ;;  %v110_v31 = vsel %vm93_vm2, %v109_v29, %v108_v28 }
  0x84   :  { %v56_v12 = vpop.f32.mrf.mxu0 }
  0x85   :  { %v69_v13 = vpop.f32.mrf.mxu1 }
  0x86   :  { %v89_v14 = vrot.slane %v69_v13, 6 }
  0x88   :  { %v92_v16 = vsel %vm91_vm1, %v56_v12, %v89_v14 }
  0x8b   :  { %v82_v18 = vpop.f32.mrf.mxu2 }
  0x8c   :  { %v90_v20 = vrot.slane %v82_v18, 4  ;;  %v58_v21 = vpop.f32.mrf.mxu0 }
  0x8d   :  { %v71_v22 = vpop.f32.mrf.mxu1 }
  0x8e   :  { %v94_v23 = vsel %vm93_vm2, %v92_v16, %v90_v20 }
  0x8f   :  { %v96_v27 = vadd.f32 %v94_v23, %v20_v19 }
  0x91   :  { %97 = vst [vmem:[#allocation2] sm:$0x3f] %v96_v27 }
  0x93   :  { %v84_v30 = vpop.f32.mrf.mxu2 }
  0x98   :  { %v101_v32 = vld [vmem:[#allocation2] sm:$0x3f] }
  0x99   :  { %v112_v33 = vadd.f32 %v110_v31, %v101_v32 }
  0x9b   :  { %113 = vst [vmem:[%s190_s3] sm:$0x3f] %v112_v33 }

// kernel: transformer_forward.16
= control target key start
LH: loop header
LB: loop body
LE: loop exit
PB: predicated region body
PF: predicated region fallthrough
CT: control target
= control target key end

     0   :  { %s554_s6 = smov 0   ;;  %s556_s7 = smov 0   ;;  %s650_s0 = inlined_call_operand.vmem [shape: bf16[2,3,4,16,8], index: 0, kind: input, shape index: {}]   ;;  %s651_s1 = inlined_call_operand.vmem [shape: bf16[2,4,16,8], index: 1, kind: output, shape index: {}]  }
   0x1   :  { %s558_s8 = smov 0   ;;  %s560_s9 = smov 0  }
   0x2   :  { %s562_s10 = smov 0   ;;  %s564_s11 = smov 0  }
   0x3   :  { %s566_s12 = smov 0  }
   0x4 LB: > { %s20_s13 = sadd.s32 1, %s534_s10  ;;  %s23_s14 = sadd.s32 1, %s538_s11  ;;  %s542_s12 = sphi %s566_s12, %s11_s12   ;;  %s538_s11 = sphi %s564_s11, %s657_s11   ;;  %s534_s10 = sphi %s562_s10, %s656_s10   ;;  %s530_s9 = sphi %s560_s9, %s655_s9   ;;  %s526_s8 = sphi %s558_s8, %s654_s8   ;;  %s522_s7 = sphi %s556_s7, %s653_s7   ;;  %s518_s6 = sphi %s554_s6, %s652_s6  }
   0x5   : > { %p21_p0 = scmp.ge.s32.totalorder %s20_s13, 4  ;;  %p39_p1 = scmp.ne.s32.totalorder %s522_s7, %s518_s6 }
   0x6   : > { %p40_p2 = scmp.eq.s32.totalorder %s542_s12, 0  ;;  %s32_s18 = sadd.s32 1, %s522_s7 }
   0x7   : > { %s659_s13 = smov (%p21_p0, %s20_s13), 0  ;;  %s661_s14 = smov (!%p21_p0, %s23_s14), %s538_s11 }
   0x8   : > { %p41_p3 = por %p40_p2, %p39_p1  ;;  %p25_p4 = scmp.ge.s32.totalorder %s661_s14, 2 }
   0x9   : > { %s28_s15 = ssub.s32 %s534_s10, %s659_s13  ;;  %p395_p6 = scmp.ge.s32.totalorder %s542_s12, 8 }
   0xa   : > { %s663_s14 = smov (%p25_p4, %s661_s14), 0 }
   0xb   : > { %s27_s16 = ssub.s32 %s538_s11, %s663_s14  ;;  %93 = sbr.rel (%p395_p6) target bundleno = 27 (0x1b), region = 16 }
   0xc   : > { %s29_s17 = sor.u32 %s28_s15, %s27_s16 }
   0xd   : > { %p30_p5 = scmp.eq.s32.totalorder %s29_s17, 0 }
   0xf   : > { %s605_s19 = scalar_select %p30_p5, %s522_s7, %s32_s18  }
  0x10   : > { %96 = sbr.rel (!%p41_p3) target bundleno = 27 (0x1b), region = 20  ;;  %s98_s20 = sand.u32 (%p41_p3), 1, %s522_s7  }
  0x11   : > { %s421_s21 = smul.u32 (%p41_p3), 24, %s98_s20  ;;  %s396_s22 = sshll.u32 (%p41_p3), %s534_s10, 1 }
  0x12   : > { %s422_s23 = smul.u32 (%p41_p3), 24, %s538_s11 }
  0x13   : > { %s100_s29 = scalar_lea.vmem (%p41_p3), [#allocation2], %s421_s21 }
  0x14   : > { %s103_s24 = sadd.s32 (%p41_p3), %s422_s23, %s396_s22 }
  0x15   : > { %s397_s25 = sshll.u32 %s103_s24, 2 }
  0x16   : > { %s105_s28 = scalar_lea.vmem %s650_s0, %s397_s25 }
  0x17   : > { %v122_v0 = vld [vmem:[%s105_s28] sm:$0xff]  }
  0x18   : > { %v126_v1 = vld [vmem:[%s105_s28 + $0x20] sm:$0xff]   ;;  %123 = vst [vmem:[%s100_s29] sm:$0xff] %v122_v0  }
  0x19   : > { %v130_v2 = vld [vmem:[%s105_s28 + $0x40] sm:$0xff]   ;;  %127 = vst [vmem:[%s100_s29 + $0x8] sm:$0xff] %v126_v1  }
  0x1a   : > { %131 = vst [vmem:[%s100_s29 + $0x10] sm:$0xff] %v130_v2  }
  0x1b PF: > { %p398_p7 = scmp.ge.s32.totalorder %s542_s12, 1  ;;  %p168_p8 = scmp.lt.s32.totalorder %s542_s12, 9 }
  0x1d   : > { %p169_p9 = pnand %p398_p7, %p168_p8 }
  0x1e   : > { %s175_s30 = sand.u32 (!%p169_p9), 1, %s518_s6   ;;  %p198_p10 = scmp.lt.s32.totalorder (!%p169_p9), %s530_s9, 1 }
  0x1f   : > { %172 = sbr.rel (%p169_p9) target bundleno = 572 (0x23c), region = 61  ;;  %p200_p11 = scmp.lt.s32.totalorder (!%p169_p9), %s526_s8, 3 }
  0x20   : > { %s423_s2 = smul.u32 (!%p169_p9), 24, %s175_s30 }
  0x22   : > { %s177_s3 = scalar_lea.vmem (!%p169_p9), [#allocation2], %s423_s2 }
  0x24   : > { %vm224_vm0 = vcmask 64512   ;;  %v419_v3 = vld [vmem:[%s177_s3 + $0x8] sm:$0xff]  ;;  %v418_v5 = vld [vmem:[%s177_s3] sm:$0xff]  ;;  %vm245_vm1 = vcmask 130048   ;;  %v420_v20 = vld [vmem:[%s177_s3 + $0x10] sm:$0xff]  ;;  %s665_s9 = smov (!%p198_p10, %s530_s9), 1 }
  0x25   : > { %v229_v4 = vsel %vm224_vm0, %v419_v3, 0  ;;  %285 = vmatpush.bf16.msra.mxu1 %v420_v20  ;;  %s667_s8 = smov (!%p200_p11, %s526_s8), 3  ;;  %s400_s5 = sshll.u32 %s665_s9, 3  ;;  %vm294_vm2 = vcmask 60416  }
  0x26   : > { %238 = vmatpush.bf16.xpose.msra.mxu0 %v229_v4  ;;  %s399_s4 = sshll.u32 %s667_s8, 1 }
  0x27   : > { %s204_s6 = sadd.s32 %s400_s5, %s399_s4 }
  0x28   : > { %s401_s15 = sshll.u32 %s204_s6, 2 }
  0x29   : > { %s206_s18 = scalar_lea.vmem %s651_s1, %s401_s15 }
  0x2d   : > { %410 = vmatmul.msk.bf16.vlgmr.msra.gmra.mxu0 %vm224_vm0, %v418_v5 }
  0xaa   : > { %v240_v6 = vpop.f32.mrf.mxu0 }
  0xab   : > { %v246_v7 = vsel %vm245_vm1, %v240_v6, -inf }
  0xac   : > { %247 = vmax.xlane.f32.xlu0 %v246_v7 }
  0xb2   : > { %v242_v8 = vpop.f32.mrf.mxu0 }
  0xb3   : > { %v249_v9 = vsel %vm245_vm1, %v242_v8, -inf }
  0xb4   : > { %250 = vmax.xlane.f32.xlu0 %v249_v9 }
 0x11f   : > { %v248_v10 = vpop.xlane.xlu0 %247 }
 0x120   : > { %v252_v11 = vsub.f32 %v240_v6, %v248_v10 }
 0x122   : > { %v254_v12 = vmul.f32 1.442695, %v252_v11 }
 0x124   : > { %480 = vpow2.f32 %v254_v12 }
 0x127   : > { %v251_v13 = vpop.xlane.xlu0 %250 }
 0x128   : > { %v253_v14 = vsub.f32 %v242_v8, %v251_v13 }
 0x12a   : > { %v481_v15 = vpop.eup %480  ;;  %v256_v16 = vmul.f32 1.442695, %v253_v14 }
 0x12b   : > { %v258_v17 = vsel %vm245_vm1, %v481_v15, 0.0 }
 0x12c   : > { %482 = vpow2.f32 %v256_v16  ;;  %259 = vadd.xlane.f32.xlu1 %v258_v17 }
 0x132   : > { %v483_v18 = vpop.eup %482 }
 0x133   : > { %v261_v19 = vsel %vm245_vm1, %v483_v18, 0.0 }
 0x134   : > { %262 = vadd.xlane.f32.xlu1 %v261_v19 }
 0x19f   : > { %v260_v21 = vpop.xlane.xlu1 %259 }
 0x1a0   : > { %484 = vrcp.f32 %v260_v21 }
 0x1a6   : > { %v485_v23 = vpop.eup %484 }
 0x1a7   : > { %v263_v22 = vpop.xlane.xlu1 %262  ;;  %v266_v25 = vmul.f32 %v485_v23, %v481_v15 }
 0x1a8   : > { %486 = vrcp.f32 %v263_v22 }
 0x1ae   : > { %v487_v24 = vpop.eup %486 }
 0x1af   : > { %v267_v26 = vmul.f32 %v487_v24, %v483_v18 }
 0x1b1   : > { %v268_v27 = vpack.c.bf16 %v267_v26, %v266_v25 }
 0x1b3   : > { %415 = vmatmul.msk.bf16.vlgmr.msra.gmra.mxu1 %vm245_vm1, %v268_v27 }
 0x230   : > { %v287_v28 = vpop.f32.mrf.mxu1 }
 0x231   : > { %v292_v29 = vpack.c.bf16 %v287_v28, %v287_v28 }
 0x233   : > { %295 = vst.msk [vmem:[%s206_s18] sm:$0xf] %vm294_vm2, %v292_v29 }
 0x238   : > { %v289_v30 = vpop.f32.mrf.mxu1 }
 0x239   : > { %v293_v31 = vpack.c.bf16 %v289_v30, %v289_v30 }
 0x23b   : > { %296 = vst.msk [vmem:[%s206_s18 + $0x4] sm:$0xf] %vm294_vm2, %v293_v31 }
 0x23c PF: > { %s11_s12 = sadd.s32 1, %s542_s12   ;;  %s652_s6 = smov %s522_s7 }
 0x23d   : > { %p8_p12 = scmp.ge.s32.totalorder %s11_s12, 10   ;;  %s653_s7 = smov %s605_s19 }
 0x23e   : > { %s654_s8 = smov %s534_s10  ;;  %s655_s9 = smov %s538_s11 }
 0x23f   : > { %s656_s10 = smov %s659_s13  ;;  %s657_s11 = smov %s663_s14 }
 0x240   :  { %10 = sbr.rel (!%p8_p12) target bundleno = 4 (0x4), region = 100 }

// kernel: transformer_forward.17
= control target key start
LH: loop header
LB: loop body
LE: loop exit
PB: predicated region body
PF: predicated region fallthrough
CT: control target
= control target key end

     0   :  { %s714_s18 = smov 0   ;;  %s716_s19 = smov 0   ;;  %s765_s0 = inlined_call_operand.vmem [shape: bf16[2,16,32], index: 0, kind: input, shape index: {}]   ;;  %s766_s1 = inlined_call_operand.vmem [shape: bf16[32,32], index: 1, kind: input, shape index: {}]   ;;  %s767_s2 = inlined_call_operand.vmem [shape: f32[1,32], index: 2, kind: input, shape index: {}]   ;;  %s768_s3 = inlined_call_operand.vmem [shape: f32[2,16,32], index: 3, kind: input, shape index: {}, may-alias: {3,5}]   ;;  %s769_s4 = inlined_call_operand.vmem [shape: f32[2,1,32], index: 4, kind: input, shape index: {}]   ;;  %s770_s5 = inlined_call_operand.vmem [shape: f32[2,16,32], index: 5, kind: output, shape index: {}, may-alias: {3,5}]  }
   0x1   :  { %s718_s20 = smov 0  }
   0x2 LB: > { %s34_s21 = sadd.s32 1, %s678_s19  ;;  %p606_p0 = scmp.ge.s32.totalorder %s682_s20, 1  ;;  %s682_s20 = sphi %s718_s20, %s15_s20   ;;  %s678_s19 = sphi %s716_s19, %s772_s19   ;;  %s674_s18 = sphi %s714_s18, %s771_s18  }
   0x3   : > { %p36_p1 = scmp.ge.s32.totalorder %s34_s21, 2  ;;  %p269_p2 = scmp.lt.s32.totalorder %s682_s20, 3 }
   0x5   : > { %s774_s21 = smov (%p36_p1, %s34_s21), 0  ;;  %p270_p3 = pnand %p606_p0, %p269_p2 }
   0x6   : > { %p334_p4 = scmp.lt.s32.totalorder (!%p270_p3), %s674_s18, 1 }
   0x7   : > { %273 = sbr.rel (%p270_p3) target bundleno = 161 (0xa1), region = 40 }
   0xc   : > { %v633_v0 = vld [vmem:[%s766_s1 + $0x8] sm:$0xff]  ;;  %v632_v1 = vld [vmem:[%s766_s1] sm:$0xff]  ;;  %s776_s18 = smov (!%p334_p4, %s674_s18), 1  ;;  %vm410_vm0 = vcmask 261120  }
   0xd   : > { %420 = vmatpush.bf16.msra.mxu0 %v633_v0  ;;  %s628_s26 = sshll.u32 %s776_s18, 3  ;;  %s368_s7 = scalar_lea.vmem %s769_s4, %s776_s18  ;;  %v658_v3 = vld [vmem:[%s767_s2] ss:$0 sm:$0xff] }
   0xe   : > { %s341_s29 = scalar_lea.vmem %s765_s0, %s628_s26  ;;  %s629_s8 = sshll.u32 %s776_s18, 4  ;;  %v659_v4 = vld [vmem:[%s368_s7] ss:$0 sm:$0xff] }
   0xf   : > { %v631_v2 = vld [vmem:[%s341_s29] sm:$0xff]  ;;  %s361_s13 = scalar_lea.vmem %s768_s3, %s629_s8  ;;  %s380_s16 = scalar_lea.vmem %s770_s5, %s629_s8 }
  0x10   : > { %v428_v7 = vld [vmem:[%s361_s13] sm:$0xff]  ;;  %v429_v9 = vld [vmem:[%s361_s13 + $0x8] sm:$0xff] }
  0x11   : > { %421 = vmatpush.bf16.msra.mxu0 %v632_v1 }
  0x14   : > { %625 = vmatmul.msk.bf16.vlgmr.msra.gmra.mxu0 %vm410_vm0, %v631_v2 }
  0x91   : > { %v423_v5 = vpop.f32.mrf.mxu0 }
  0x92   : > { %v424_v6 = vadd.f32 %v658_v3, %v423_v5 }
  0x94   : > { %v434_v8 = vmul.f32 %v659_v4, %v424_v6 }
  0x96   : > { %v436_v10 = vadd.f32 %v434_v8, %v428_v7 }
  0x98   : > { %438 = vst.msk [vmem:[%s380_s16] sm:$0xff] %vm410_vm0, %v436_v10 }
  0x99   : > { %v425_v11 = vpop.f32.mrf.mxu0 }
  0x9a   : > { %v426_v12 = vadd.f32 %v658_v3, %v425_v11 }
  0x9c   : > { %v435_v13 = vmul.f32 %v659_v4, %v426_v12 }
  0x9e   : > { %v437_v14 = vadd.f32 %v435_v13, %v429_v9 }
  0xa0   : > { %439 = vst.msk [vmem:[%s380_s16 + $0x8] sm:$0xff] %vm410_vm0, %v437_v14 }
  0xa1 PF: > { %s15_s20 = sadd.s32 1, %s682_s20   ;;  %s771_s18 = smov %s678_s19 }
  0xa2   : > { %p12_p5 = scmp.ge.s32.totalorder %s15_s20, 4   ;;  %s772_s19 = smov %s774_s21 }
  0xa4   :  { %14 = sbr.rel (!%p12_p5) target bundleno = 2 (0x2), region = 82 }

// kernel: transformer_forward.18
= control target key start
LH: loop header
LB: loop body
LE: loop exit
PB: predicated region body
PF: predicated region fallthrough
CT: control target
= control target key end

     0   :  { %s823_s18 = smov 0   ;;  %s825_s19 = smov 0   ;;  %s905_s0 = inlined_call_operand.vmem [shape: f32[2,16,32], index: 0, kind: input, shape index: {}]   ;;  %s906_s1 = inlined_call_operand.vmem [shape: f32[2,1,32], index: 1, kind: input, shape index: {}]   ;;  %s907_s2 = inlined_call_operand.vmem [shape: f32[2,1,32], index: 2, kind: input, shape index: {}]   ;;  %s908_s3 = inlined_call_operand.vmem [shape: bf16[32,64], index: 3, kind: input, shape index: {}]   ;;  %s909_s4 = inlined_call_operand.vmem [shape: f32[1,64], index: 4, kind: input, shape index: {}]   ;;  %s910_s5 = inlined_call_operand.vmem [shape: bf16[2,16,64], index: 5, kind: output, shape index: {}]  }
   0x1   :  { %s827_s20 = smov 0  }
   0x2 LB: > { %s34_s21 = sadd.s32 1, %s786_s19  ;;  %p703_p0 = scmp.ge.s32.totalorder %s790_s20, 1  ;;  %s790_s20 = sphi %s827_s20, %s15_s20   ;;  %s786_s19 = sphi %s825_s19, %s912_s19   ;;  %s782_s18 = sphi %s823_s18, %s911_s18  }
   0x3   : > { %p36_p1 = scmp.ge.s32.totalorder %s34_s21, 2  ;;  %p250_p2 = scmp.lt.s32.totalorder %s790_s20, 3 }
   0x5   : > { %s914_s21 = smov (%p36_p1, %s34_s21), 0  ;;  %p251_p3 = pnand %p703_p0, %p250_p2 }
   0x6   : > { %p303_p4 = scmp.lt.s32.totalorder (!%p251_p3), %s782_s18, 1 }
   0x7   : > { %254 = sbr.rel (%p251_p3) target bundleno = 492 (0x1ec), region = 40 }
   0xc   : > { %s916_s18 = smov (!%p303_p4, %s782_s18), 1  ;;  %vm345_vm0 = vcmask 261120   ;;  %v792_v4 = vmov 32.0   ;;  %v729_v24 = vld [vmem:[%s908_s3 + $0x8] sm:$0xff]  ;;  %v728_v27 = vld [vmem:[%s908_s3] sm:$0xff]  ;;  %vm411_vm6 = vcmask 257024  }
   0xd   : > { %s725_s22 = sshll.u32 %s916_s18, 4  ;;  %s314_s28 = scalar_lea.vmem %s906_s1, %s916_s18  ;;  %758 = vrcp.f32 %v792_v4  ;;  %451 = vmatpush.bf16.msra.mxu0 %v729_v24  ;;  %v757_v54 = vld [vmem:[%s909_s4] ss:$0 sm:$0xff] }
   0xe   : > { %s310_s25 = scalar_lea.vmem %s905_s0, %s725_s22  ;;  %s317_s6 = scalar_lea.vmem %s907_s2, %s916_s18  ;;  %v755_v37 = vld [vmem:[%s314_s28] ss:$0 sm:$0xff] }
   0xf   : > { %v343_v0 = vld [vmem:[%s310_s25] sm:$0xff]  ;;  %v344_v2 = vld [vmem:[%s310_s25 + $0x8] sm:$0xff]  ;;  %s726_s17 = sshll.u32 %s916_s18, 3 }
  0x10   : > { %v346_v1 = vsel %vm345_vm0, %v343_v0, 0.0  ;;  %v349_v3 = vsel %vm345_vm0, %v344_v2, 0.0  ;;  %v756_v40 = vld [vmem:[%s317_s6] ss:$0 sm:$0xff]  ;;  %s336_s24 = scalar_lea.vmem %s910_s5, %s726_s17 }
  0x11   : > { %347 = vadd.xlane.f32.xlu0 %v346_v1  ;;  %452 = vmatpush.bf16.msra.mxu0 %v728_v27 }
  0x13   : > { %v759_v5 = vpop.eup %758 }
  0x14   : > { %v353_v6 = vmul.f32 32.0, %v759_v5  ;;  %vm357_vm1 = vweird.f32 %v759_v5 }
  0x16   : > { %v354_v7 = vsub.f32 1.0, %v353_v6 }
  0x18   : > { %v355_v8 = vmul.f32 %v759_v5, %v354_v7 }
  0x19   : > { %350 = vadd.xlane.f32.xlu0 %v349_v3 }
  0x1a   : > { %v356_v9 = vadd.f32 %v759_v5, %v355_v8 }
  0x1c   : > { %v358_v10 = vsel %vm357_vm1, %v759_v5, %v356_v9 }
  0x84   : > { %v348_v11 = vpop.xlane.xlu0 %347 }
  0x85   : > { %v359_v12 = vmul.f32 %v358_v10, %v348_v11 }
  0x87   : > { %v361_v13 = vsub.f32 %v343_v0, %v359_v12 }
  0x89   : > { %v363_v14 = vmul.f32 %v361_v13, %v361_v13 }
  0x8b   : > { %v365_v15 = vsel %vm345_vm0, %v363_v14, 0.0 }
  0x8c   : > { %366 = vadd.xlane.f32.xlu1 %v365_v15  ;;  %v351_v16 = vpop.xlane.xlu0 %350 }
  0x8d   : > { %v360_v17 = vmul.f32 %v358_v10, %v351_v16 }
  0x8f   : > { %v362_v18 = vsub.f32 %v344_v2, %v360_v17 }
  0x91   : > { %v364_v19 = vmul.f32 %v362_v18, %v362_v18 }
  0x93   : > { %v368_v20 = vsel %vm345_vm0, %v364_v19, 0.0 }
  0x94   : > { %369 = vadd.xlane.f32.xlu1 %v368_v20 }
  0xff   : > { %v367_v21 = vpop.xlane.xlu1 %366 }
 0x100   : > { %v371_v22 = vmul.f32 %v367_v21, %v358_v10 }
 0x102   : > { %v373_v23 = vadd.f32 1e-05, %v371_v22 }
 0x104   : > { %760 = vrsqrt.f32 %v373_v23  ;;  %vm381_vm3 = vweird.f32 %v373_v23 }
 0x107   : > { %v370_v25 = vpop.xlane.xlu1 %369 }
 0x108   : > { %v372_v26 = vmul.f32 %v370_v25, %v358_v10 }
 0x10a   : > { %v761_v28 = vpop.eup %760  ;;  %v374_v29 = vadd.f32 1e-05, %v372_v26 }
 0x10b   : > { %v376_v30 = vmul.f32 %v761_v28, %v373_v23  ;;  %vm382_vm2 = vweird.f32 %v761_v28 }
 0x10c   : > { %762 = vrsqrt.f32 %v374_v29  ;;  %vm383_vm4 = vmor %vm381_vm3, %vm382_vm2  ;;  %vm391_vm7 = vweird.f32 %v374_v29 }
 0x10d   : > { %v377_v31 = vmul.f32 %v761_v28, %v376_v30 }
 0x10f   : > { %v378_v32 = vmul.f32 0.5, %v377_v31 }
 0x111   : > { %v379_v33 = vsub.f32 1.5, %v378_v32 }
 0x112   : > { %v763_v34 = vpop.eup %762 }
 0x113   : > { %v380_v35 = vmul.f32 %v761_v28, %v379_v33  ;;  %v386_v36 = vmul.f32 %v763_v34, %v374_v29  ;;  %vm392_vm5 = vweird.f32 %v763_v34 }
 0x114   : > { %vm393_vm8 = vmor %vm391_vm7, %vm392_vm5 }
 0x115   : > { %v384_v38 = vsel %vm383_vm4, %v761_v28, %v380_v35  ;;  %v387_v39 = vmul.f32 %v763_v34, %v386_v36 }
 0x116   : > { %v395_v41 = vmul.f32 %v384_v38, %v361_v13 }
 0x117   : > { %v388_v42 = vmul.f32 0.5, %v387_v39 }
 0x118   : > { %v401_v43 = vmul.f32 %v755_v37, %v395_v41 }
 0x119   : > { %v389_v44 = vsub.f32 1.5, %v388_v42 }
 0x11a   : > { %v407_v45 = vadd.f32 %v756_v40, %v401_v43 }
 0x11b   : > { %v390_v46 = vmul.f32 %v763_v34, %v389_v44 }
 0x11c   : > { %v409_v47 = vpack.c.bf16 %v407_v45, %v407_v45 }
 0x11d   : > { %v394_v48 = vsel %vm393_vm8, %v763_v34, %v390_v46 }
 0x11e   : > { %412 = vst.msk [vmem:[#allocation2] sm:$0xf] %vm411_vm6, %v409_v47  ;;  %v396_v49 = vmul.f32 %v394_v48, %v362_v18 }
 0x120   : > { %v402_v50 = vmul.f32 %v755_v37, %v396_v49 }
 0x122   : > { %v408_v51 = vadd.f32 %v756_v40, %v402_v50 }
 0x124   : > { %v410_v52 = vpack.c.bf16 %v408_v51, %v408_v51 }
 0x126   : > { %413 = vst.msk [vmem:[#allocation2 + $0x4] sm:$0xf] %vm411_vm6, %v410_v52 }
 0x12d   : > { %v727_v53 = vld [vmem:[#allocation2] sm:$0xff] }
 0x12e   : > { %720 = vmatmul.msk.bf16.vlgmr.msra.gmra.mxu0 %vm345_vm0, %v727_v53  ;;  %vm549_vm0 = vcmask 519168  }
 0x1ab   : > { %v454_v55 = vpop.f32.mrf.mxu0 }
 0x1ac   : > { %v879_v56 = vadd.f32 %v757_v54, %v454_v55 }
 0x1ae   : > { %v461_v57 = vmul.f32 0.70710677, %v879_v56 }
 0x1b0   : > { %v463_v58 = vmul.f32 %v461_v57, %v461_v57 }
 0x1b2   : > { %v464_v59 = vmin.f32 %v463_v58, 16.0 }
 0x1b3   : > { %v456_v60 = vpop.f32.mrf.mxu0 }
 0x1b4   : > { %v465_v61 = vmul.f32 2.1237322e-06, %v464_v59  ;;  %v476_v62 = vmul.f32 3.8918573e-05, %v464_v59  ;;  %v882_v63 = vadd.f32 %v757_v54, %v456_v60 }
 0x1b6   : > { %v466_v0 = vadd.f32 0.00028619796, %v465_v61  ;;  %v477_v1 = vadd.f32 0.001143296, %v476_v62  ;;  %v885_v2 = vmul.f32 0.70710677, %v882_v63 }
 0x1b7   : > { %v459_v62 = vmul.f32 0.5, %v879_v56 }
 0x1b8   : > { %v467_v3 = vmul.f32 %v466_v0, %v464_v59  ;;  %v478_v4 = vmul.f32 %v477_v1, %v464_v59  ;;  %v503_v5 = vmul.f32 %v885_v2, %v885_v2 }
 0x1ba   : > { %v479_v6 = vadd.f32 0.014752088, %v478_v4  ;;  %v468_v7 = vadd.f32 0.0036580483, %v467_v3  ;;  %v504_v8 = vmin.f32 %v503_v5, 16.0 }
 0x1bc   : > { %v480_v9 = vmul.f32 %v479_v6, %v464_v59  ;;  %v505_v10 = vmul.f32 2.1237322e-06, %v504_v8  ;;  %v516_v11 = vmul.f32 3.8918573e-05, %v504_v8  ;;  %v469_v13 = vmul.f32 %v468_v7, %v464_v59 }
 0x1be   : > { %v481_v12 = vadd.f32 0.112945676, %v480_v9  ;;  %v506_v14 = vadd.f32 0.00028619796, %v505_v10  ;;  %v517_v15 = vadd.f32 0.001143296, %v516_v11 }
 0x1bf   : > { %v470_v20 = vadd.f32 0.05243302, %v469_v13  ;;  %v460_v9 = vmul.f32 0.5, %v882_v63 }
 0x1c0   : > { %v482_v16 = vmul.f32 %v481_v12, %v464_v59  ;;  %v507_v17 = vmul.f32 %v506_v14, %v504_v8  ;;  %v518_v18 = vmul.f32 %v517_v15, %v504_v8 }
 0x1c1   : > { %v471_v26 = vmul.f32 %v470_v20, %v464_v59 }
 0x1c2   : > { %v483_v19 = vadd.f32 0.4994258, %v482_v16  ;;  %v519_v21 = vadd.f32 0.014752088, %v518_v18  ;;  %v508_v23 = vadd.f32 0.0036580483, %v507_v17 }
 0x1c3   : > { %v472_v30 = vadd.f32 0.18741608, %v471_v26 }
 0x1c4   : > { %v484_v22 = vmul.f32 %v483_v19, %v464_v59  ;;  %v520_v24 = vmul.f32 %v519_v21, %v504_v8  ;;  %v509_v28 = vmul.f32 %v508_v23, %v504_v8 }
 0x1c5   : > { %v473_v35 = vmul.f32 %v472_v30, %v464_v59 }
 0x1c6   : > { %v485_v25 = vadd.f32 1.0, %v484_v22  ;;  %v521_v27 = vadd.f32 0.112945676, %v520_v24  ;;  %v510_v32 = vadd.f32 0.05243302, %v509_v28 }
 0x1c7   : > { %v474_v41 = vadd.f32 1.1283791, %v473_v35 }
 0x1c8   : > { %764 = vrcp.f32 %v485_v25  ;;  %v522_v29 = vmul.f32 %v521_v27, %v504_v8  ;;  %v511_v38 = vmul.f32 %v510_v32, %v504_v8  ;;  %v497_v40 = vand.u32 2147483648, %v485_v25 }
 0x1c9   : > { %v495_v43 = vand.u32 2147483647, %v485_v25  ;;  %vm491_vm10 = vweird.f32 %v485_v25  ;;  %v475_v48 = vmul.f32 %v474_v41, %v461_v57 }
 0x1ca   : > { %v523_v31 = vadd.f32 0.4994258, %v522_v29  ;;  %v512_v44 = vadd.f32 0.18741608, %v511_v38  ;;  %v498_v46 = vor.u32 1.1754944e-38, %v497_v40 }
 0x1cb   : > { %vm496_vm12 = vcmp.eq.f32.partialorder %v495_v43, 8.507059e+37 }
 0x1cc   : > { %v524_v33 = vmul.f32 %v523_v31, %v504_v8  ;;  %v513_v51 = vmul.f32 %v512_v44, %v504_v8 }
 0x1ce   : > { %v765_v34 = vpop.eup %764  ;;  %v525_v37 = vadd.f32 1.0, %v524_v33  ;;  %v514_v59 = vadd.f32 1.1283791, %v513_v51 }
 0x1cf   : > { %v487_v36 = vmul.f32 %v765_v34, %v485_v25  ;;  %vm492_vm9 = vweird.f32 %v765_v34 }
 0x1d0   : > { %766 = vrcp.f32 %v525_v37  ;;  %vm493_vm11 = vmor %vm491_vm10, %vm492_vm9  ;;  %v537_v58 = vand.u32 2147483648, %v525_v37  ;;  %v535_v61 = vand.u32 2147483647, %v525_v37  ;;  %vm531_vm14 = vweird.f32 %v525_v37 }
 0x1d1   : > { %v488_v39 = vsub.f32 1.0, %v487_v36  ;;  %v515_v4 = vmul.f32 %v514_v59, %v885_v2 }
 0x1d2   : > { %v538_v3 = vor.u32 1.1754944e-38, %v537_v58  ;;  %vm536_vm1 = vcmp.eq.f32.partialorder %v535_v61, 8.507059e+37 }
 0x1d3   : > { %v489_v42 = vmul.f32 %v765_v34, %v488_v39 }
 0x1d5   : > { %v490_v45 = vadd.f32 %v765_v34, %v489_v42 }
 0x1d6   : > { %v767_v47 = vpop.eup %766 }
 0x1d7   : > { %v494_v49 = vsel %vm493_vm11, %v765_v34, %v490_v45  ;;  %v527_v52 = vmul.f32 %v767_v47, %v525_v37  ;;  %vm532_vm13 = vweird.f32 %v767_v47 }
 0x1d8   : > { %v499_v50 = vsel %vm496_vm12, %v498_v46, %v494_v49  ;;  %vm533_vm15 = vmor %vm531_vm14, %vm532_vm13 }
 0x1d9   : > { %v500_v53 = vmul.f32 %v499_v50, %v475_v48  ;;  %v528_v54 = vsub.f32 1.0, %v527_v52 }
 0x1db   : > { %v721_v55 = vclamps-f32 %v500_v53, 1.0  ;;  %v529_v60 = vmul.f32 %v767_v47, %v528_v54 }
 0x1dd   : > { %v543_v0 = vadd.f32 1.0, %v721_v55  ;;  %v530_v1 = vadd.f32 %v767_v47, %v529_v60 }
 0x1df   : > { %v545_v57 = vmul.f32 %v543_v0, %v459_v62  ;;  %v534_v5 = vsel %vm533_vm15, %v767_v47, %v530_v1 }
 0x1e0   : > { %v539_v7 = vsel %vm536_vm1, %v538_v3, %v534_v5 }
 0x1e1   : > { %v547_v6 = vpack.c.bf16 %v545_v57, %v545_v57  ;;  %v540_v8 = vmul.f32 %v539_v7, %v515_v4 }
 0x1e3   : > { %550 = vst.msk [vmem:[%s336_s24] sm:$0xf] %vm549_vm0, %v547_v6  ;;  %v722_v56 = vclamps-f32 %v540_v8, 1.0 }
 0x1e5   : > { %v544_v10 = vadd.f32 1.0, %v722_v56 }
 0x1e7   : > { %v546_v11 = vmul.f32 %v544_v10, %v460_v9 }
 0x1e9   : > { %v548_v12 = vpack.c.bf16 %v546_v11, %v546_v11 }
 0x1eb   : > { %551 = vst.msk [vmem:[%s336_s24 + $0x4] sm:$0xf] %vm549_vm0, %v548_v12 }
 0x1ec PF: > { %s15_s20 = sadd.s32 1, %s790_s20   ;;  %s911_s18 = smov %s786_s19 }
 0x1ed   : > { %p12_p5 = scmp.ge.s32.totalorder %s15_s20, 4   ;;  %s912_s19 = smov %s914_s21 }
 0x1ef   :  { %14 = sbr.rel (!%p12_p5) target bundleno = 2 (0x2), region = 86 }

// kernel: transformer_forward.25
= control target key start
LH: loop header
LB: loop body
LE: loop exit
PB: predicated region body
PF: predicated region fallthrough
CT: control target
= control target key end

     0   :  { %vm19_vm0 = vcmask 64512   ;;  %v124_v1 = vmov 0.0   ;;  %vm50_vm1 = vcmask 261120   ;;  %s190_s1 = inlined_call_operand.vmem [shape: bf16[32,8], index: 1, kind: input, shape index: {}]   ;;  %s191_s0 = inlined_call_operand.vmem [shape: f32[32,32], index: 0, kind: input, shape index: {}]   ;;  %s192_s2 = inlined_call_operand.vmem [shape: f32[1,8], index: 2, kind: input, shape index: {}]   ;;  %s193_s3 = inlined_call_operand.vmem [shape: f32[32,8], index: 3, kind: output, shape index: {}]  }
   0x1   :  { %v119_v0 = vld [vmem:[%s190_s1 + $0x8] sm:$0xff]  ;;  %20 = vst.msk [vmem:[#allocation2] sm:$0xff] %vm19_vm0, %v124_v1  ;;  %v118_v2 = vld [vmem:[%s190_s1] sm:$0xff]  ;;  %v30_v5 = vld [vmem:[%s191_s0 + $0x10] sm:$0xff] }
   0x2   :  { %v28_v3 = vld [vmem:[%s191_s0] sm:$0xff]  ;;  %v29_v4 = vld [vmem:[%s191_s0 + $0x8] sm:$0xff]  ;;  %21 = vst.msk [vmem:[#allocation2 + $0x8] sm:$0xff] %vm19_vm0, %v124_v1  ;;  %63 = vmatpush.bf16.msra.mxu0 %v119_v0  ;;  %120 = vmatpush.bf16.msra.mxu1 %v119_v0  ;;  %v31_v6 = vld [vmem:[%s191_s0 + $0x18] sm:$0xff] }
   0x3   :  { %22 = vst.msk [vmem:[#allocation2 + $0x10] sm:$0xff] %vm19_vm0, %v124_v1  ;;  %v32_v7 = vpack.c.bf16 %v29_v4, %v28_v3  ;;  %v33_v8 = vpack.c.bf16 %v31_v6, %v30_v5  ;;  %v123_v17 = vld [vmem:[%s192_s2] ss:$0 sm:$0xff] }
   0x4   :  { %23 = vst.msk [vmem:[#allocation2 + $0x18] sm:$0xff] %vm19_vm0, %v124_v1 }
   0x6   :  { %64 = vmatpush.bf16.msra.mxu0 %v118_v2  ;;  %121 = vmatpush.bf16.msra.mxu1 %v118_v2 }
   0x8   :  { %v24_v9 = vld [vmem:[#allocation2] sm:$0xff] }
   0x9   :  { %116 = vmatmul.msk.bf16.vlgmr.msra.gmra.mxu0 %vm50_vm1, %v32_v7  ;;  %117 = vmatmul.msk.bf16.vlgmr.msra.gmra.mxu1 %vm50_vm1, %v33_v8  ;;  %v25_v15 = vld [vmem:[#allocation2 + $0x8] sm:$0xff] }
   0xa   :  { %v26_v10 = vld [vmem:[#allocation2 + $0x10] sm:$0xff] }
   0xb   :  { %v27_v16 = vld [vmem:[#allocation2 + $0x18] sm:$0xff] }
  0x86   :  { %v66_v11 = vpop.f32.mrf.mxu0  ;;  %v71_v12 = vpop.f32.mrf.mxu1 }
  0x87   :  { %v76_v13 = vadd.f32 %v66_v11, %v24_v9  ;;  %v78_v14 = vadd.f32 %v71_v12, %v26_v10 }
  0x89   :  { %81 = vst.msk [vmem:[#allocation2] sm:$0xff] %vm19_vm0, %v76_v13 }
  0x8a   :  { %83 = vst.msk [vmem:[#allocation2 + $0x10] sm:$0xff] %vm19_vm0, %v78_v14 }
  0x8e   :  { %v68_v18 = vpop.f32.mrf.mxu0  ;;  %v73_v19 = vpop.f32.mrf.mxu1 }
  0x8f   :  { %v77_v20 = vadd.f32 %v68_v18, %v25_v15  ;;  %v79_v21 = vadd.f32 %v73_v19, %v27_v16 }
  0x90   :  { %v88_v22 = vld [vmem:[#allocation2] sm:$0xff] }
  0x91   :  { %v96_v23 = vadd.f32 %v123_v17, %v88_v22  ;;  %v90_v24 = vld [vmem:[#allocation2 + $0x10] sm:$0xff]  ;;  %82 = vst.msk [vmem:[#allocation2 + $0x8] sm:$0xff] %vm19_vm0, %v77_v20 }
  0x92   :  { %v98_v25 = vadd.f32 %v123_v17, %v90_v24  ;;  %84 = vst.msk [vmem:[#allocation2 + $0x18] sm:$0xff] %vm19_vm0, %v79_v21 }
  0x93   :  { %100 = vst.msk [vmem:[%s193_s3] sm:$0xff] %vm19_vm0, %v96_v23 }
  0x94   :  { %102 = vst.msk [vmem:[%s193_s3 + $0x10] sm:$0xff] %vm19_vm0, %v98_v25 }
  0x98   :  { %v89_v26 = vld [vmem:[#allocation2 + $0x8] sm:$0xff] }
  0x99   :  { %v97_v27 = vadd.f32 %v123_v17, %v89_v26  ;;  %v91_v28 = vld [vmem:[#allocation2 + $0x18] sm:$0xff] }
  0x9a   :  { %v99_v29 = vadd.f32 %v123_v17, %v91_v28 }
  0x9b   :  { %101 = vst.msk [vmem:[%s193_s3 + $0x8] sm:$0xff] %vm19_vm0, %v97_v27 }
  0x9c   :  { %103 = vst.msk [vmem:[%s193_s3 + $0x18] sm:$0xff] %vm19_vm0, %v99_v29 }

// kernel: transformer_forward.19
= control target key start
LH: loop header
LB: loop body
LE: loop exit
PB: predicated region body
PF: predicated region fallthrough
CT: control target
= control target key end

     0   :  { %s741_s18 = smov 0   ;;  %s743_s19 = smov 0   ;;  %s795_s0 = inlined_call_operand.vmem [shape: bf16[2,16,64], index: 0, kind: input, shape index: {}]   ;;  %s796_s1 = inlined_call_operand.vmem [shape: bf16[64,32], index: 1, kind: input, shape index: {}]   ;;  %s797_s2 = inlined_call_operand.vmem [shape: f32[1,32], index: 2, kind: input, shape index: {}]   ;;  %s798_s3 = inlined_call_operand.vmem [shape: f32[2,16,32], index: 3, kind: input, shape index: {}, may-alias: {3,5}]   ;;  %s799_s4 = inlined_call_operand.vmem [shape: f32[2,1,32], index: 4, kind: input, shape index: {}]   ;;  %s800_s5 = inlined_call_operand.vmem [shape: f32[2,16,32], index: 5, kind: output, shape index: {}, may-alias: {3,5}]  }
   0x1   :  { %s745_s20 = smov 0  }
   0x2 LB: > { %s34_s21 = sadd.s32 1, %s705_s19  ;;  %p623_p0 = scmp.ge.s32.totalorder %s709_s20, 1  ;;  %s709_s20 = sphi %s745_s20, %s15_s20   ;;  %s705_s19 = sphi %s743_s19, %s802_s19   ;;  %s701_s18 = sphi %s741_s18, %s801_s18  }
   0x3   : > { %p36_p1 = scmp.ge.s32.totalorder %s34_s21, 2  ;;  %p269_p2 = scmp.lt.s32.totalorder %s709_s20, 3 }
   0x5   : > { %s804_s21 = smov (%p36_p1, %s34_s21), 0  ;;  %p270_p3 = pnand %p623_p0, %p269_p2 }
   0x6   : > { %p334_p4 = scmp.lt.s32.totalorder (!%p270_p3), %s701_s18, 1 }
   0x7   : > { %273 = sbr.rel (%p270_p3) target bundleno = 169 (0xa9), region = 40 }
   0xc   : > { %v660_v0 = vld [vmem:[%s796_s1 + $0x18] sm:$0xff]  ;;  %v659_v1 = vld [vmem:[%s796_s1 + $0x10] sm:$0xff]  ;;  %s806_s18 = smov (!%p334_p4, %s701_s18), 1  ;;  %v658_v2 = vld [vmem:[%s796_s1 + $0x8] sm:$0xff]  ;;  %vm426_vm0 = vcmask 523264   ;;  %vm454_vm1 = vcmask 261120  }
   0xd   : > { %434 = vmatpush.bf16.msra.mxu0 %v660_v0  ;;  %s368_s30 = scalar_lea.vmem %s799_s4, %s806_s18  ;;  %s653_s6 = sshll.u32 %s806_s18, 3  ;;  %v657_v3 = vld [vmem:[%s796_s1] sm:$0xff] }
   0xe   : > { %s341_s11 = scalar_lea.vmem %s795_s0, %s653_s6  ;;  %s654_s12 = sshll.u32 %s806_s18, 4  ;;  %v685_v5 = vld [vmem:[%s797_s2] ss:$0 sm:$0xff] }
   0xf   : > { %v656_v4 = vld [vmem:[%s341_s11] sm:$0xff]  ;;  %s361_s17 = scalar_lea.vmem %s798_s3, %s654_s12  ;;  %s380_s24 = scalar_lea.vmem %s800_s5, %s654_s12 }
  0x10   : > { %v686_v6 = vld [vmem:[%s368_s30] ss:$0 sm:$0xff]  ;;  %v445_v11 = vld [vmem:[%s361_s17 + $0x8] sm:$0xff] }
  0x11   : > { %435 = vmatpush.bf16.msra.mxu0 %v659_v1  ;;  %v444_v9 = vld [vmem:[%s361_s17] sm:$0xff] }
  0x15   : > { %436 = vmatpush.bf16.msra.mxu0 %v658_v2 }
  0x19   : > { %437 = vmatpush.bf16.msra.mxu0 %v657_v3 }
  0x1c   : > { %650 = vmatmul.msk.bf16.vlgmr.msra.gmra.mxu0 %vm426_vm0, %v656_v4 }
  0x99   : > { %v439_v7 = vpop.f32.mrf.mxu0 }
  0x9a   : > { %v440_v8 = vadd.f32 %v685_v5, %v439_v7 }
  0x9c   : > { %v450_v10 = vmul.f32 %v686_v6, %v440_v8 }
  0x9e   : > { %v452_v12 = vadd.f32 %v450_v10, %v444_v9 }
  0xa0   : > { %455 = vst.msk [vmem:[%s380_s24] sm:$0xff] %vm454_vm1, %v452_v12 }
  0xa1   : > { %v441_v13 = vpop.f32.mrf.mxu0 }
  0xa2   : > { %v442_v14 = vadd.f32 %v685_v5, %v441_v13 }
  0xa4   : > { %v451_v15 = vmul.f32 %v686_v6, %v442_v14 }
  0xa6   : > { %v453_v16 = vadd.f32 %v451_v15, %v445_v11 }
  0xa8   : > { %456 = vst.msk [vmem:[%s380_s24 + $0x8] sm:$0xff] %vm454_vm1, %v453_v16 }
  0xa9 PF: > { %s15_s20 = sadd.s32 1, %s709_s20   ;;  %s801_s18 = smov %s705_s19 }
  0xaa   : > { %p12_p5 = scmp.ge.s32.totalorder %s15_s20, 4   ;;  %s802_s19 = smov %s804_s21 }
  0xac   :  { %14 = sbr.rel (!%p12_p5) target bundleno = 2 (0x2), region = 82 }

</bundles_post_ra>
